<compile_context>
chip_gen: v7x
topology: tpu7x:2x2x1
jax: 0.10.0
libtpu: 0.0.40
codegen_flags: <defaults>
</compile_context>

<pallas_src>
import functools

import jax
import jax.numpy as jnp
from jax.experimental import pallas as pl
from jax.experimental.pallas import tpu as pltpu

LEAKY_ALPHA = 0.01
LANE = 128
SUBLANE = 8


def _round_up(n, m):
    return ((n + m - 1) // m) * m


def autoencoder_kernel(x_ref, w_ref, b_ref, dec_ref, lat_ref, *,
                       n_layers, latent_layer, mm_dtype, lat_slab):
    """One batch tile through all 8 Linear+LeakyReLU layers.

    x_ref:   (tb, W)       io dtype (f32 or bf16)
    w_ref:   (8, W, W)     mm_dtype  -- zero-padded per-layer weight tiles, VMEM-resident
    b_ref:   (8, W)        f32       -- zero-padded biases, VMEM-resident
    dec_ref: (tb, W)       io dtype
    lat_ref: (tb, lat_slab) io dtype  -- lane-dense (>=128 wide) latent slab
    """
    h = x_ref[...].astype(mm_dtype)                      # no-op cast on the bf16 I/O path
    for l in range(n_layers):
        y = jnp.dot(h, w_ref[l], preferred_element_type=jnp.float32)
        y = y + b_ref[pl.ds(l, 1), :]                    # f32 bias add
        a = jnp.maximum(y, LEAKY_ALPHA * y)              # leaky ReLU, f32 epilogue (v5e-safe)
        if l == latent_layer:                            # end of encoder -> latent
            lat_ref[...] = a[:, :lat_slab].astype(lat_ref.dtype)
        h = a.astype(mm_dtype)                           # feed next matmul (no-op for f32)
    dec_ref[...] = h.astype(dec_ref.dtype)


def _pack_params(params, input_dim, latent_dim, mm_dtype):
    """Zero-pad every layer to a (max_w, max_w) tile and stack into one 3-D buffer."""
    h1, h2, h3 = input_dim // 2, input_dim // 4, input_dim // 8
    widths = [input_dim, h1, h2, h3, latent_dim, h3, h2, h1, input_dim]
    widths_pad = [max(_round_up(w, LANE), LANE) for w in widths]
    max_w = max(widths_pad)
    lat_slab = widths_pad[4]                             # lane-dense latent slab width

    n_layers = len(params)
    w_packed = jnp.zeros((n_layers, max_w, max_w), mm_dtype)
    b_packed = jnp.zeros((n_layers, max_w), jnp.float32)
    real_dims = []
    for l, (w, b) in enumerate(params):
        kin, nout = w.shape
        real_dims.append((kin, nout))
        w_packed = w_packed.at[l, :kin, :nout].set(w.astype(mm_dtype))
        b_packed = b_packed.at[l, :nout].set(b.reshape(-1).astype(jnp.float32))
    return w_packed, b_packed, max_w, lat_slab, real_dims


def _choose_batch_tile(B, batch_tile):
    """Sublane-aligned batch tile; aim for >=2 grid steps (v7x megacore) when B allows."""
    if B <= 2 * SUBLANE:
        return _round_up(max(B, 1), SUBLANE)
    return min(batch_tile, _round_up(-(-B // 2), SUBLANE))   # ceil(B/2), aligned, capped


def autoencoder_forward(x, params, *, matmul_dtype=jnp.bfloat16, batch_tile=512):
    """x: (B, input_dim); params: list of 8 (W (in,out), b (out,)) tuples.
    Returns (decoded (B, input_dim), latent (B, latent_dim)) in the I/O dtype
    (bf16 when matmul_dtype is bf16, else f32)."""
    B, input_dim = x.shape
    latent_dim = params[3][0].shape[1]
    io_dtype = jnp.bfloat16 if matmul_dtype == jnp.bfloat16 else jnp.float32

    w_packed, b_packed, max_w, lat_slab, real_dims = _pack_params(
        params, input_dim, latent_dim, matmul_dtype)
    n_layers = len(params)

    tb = _choose_batch_tile(B, batch_tile)
    b_pad = _round_up(B, tb)
    grid = (b_pad // tb,)

    # Skip the materialized pad/copy when it is a no-op.
    if B == b_pad and input_dim == max_w:
        x_in = x if x.dtype == jnp.dtype(io_dtype) else x.astype(io_dtype)
    else:
        x_in = jnp.zeros((b_pad, max_w), io_dtype).at[:B, :input_dim].set(
            x.astype(io_dtype))

    kernel = functools.partial(
        autoencoder_kernel,
        n_layers=n_layers, latent_layer=3, mm_dtype=matmul_dtype, lat_slab=lat_slab)

    io_itemsize = 2 if io_dtype == jnp.bfloat16 else 4
    flops = 2 * B * sum(k * n for (k, n) in real_dims)              # real (unpadded) work
    bytes_accessed = (b_pad * max_w * io_itemsize                   # x
                      + w_packed.size * w_packed.dtype.itemsize     # weights (resident)
                      + b_packed.size * 4                           # biases
                      + b_pad * (max_w + lat_slab) * io_itemsize)   # decoded + latent

    dec_pad, lat_pad = pl.pallas_call(
        kernel,
        out_shape=(
            jax.ShapeDtypeStruct((b_pad, max_w), io_dtype),     # decoded (padded)
            jax.ShapeDtypeStruct((b_pad, lat_slab), io_dtype),  # latent  (lane-dense slab)
        ),
        grid=grid,
        in_specs=[
            pl.BlockSpec((tb, max_w), lambda i: (i, 0)),                       # batch-tiled x
            pl.BlockSpec((n_layers, max_w, max_w), lambda i: (0, 0, 0)),       # weights: resident
            pl.BlockSpec((n_layers, max_w), lambda i: (0, 0)),                 # biases:  resident
        ],
        out_specs=(
            pl.BlockSpec((tb, max_w), lambda i: (i, 0)),
            pl.BlockSpec((tb, lat_slab), lambda i: (i, 0)),
        ),
        compiler_params=pltpu.CompilerParams(
            dimension_semantics=("parallel",)),                    # megacore sharding on v7x
        cost_estimate=pl.CostEstimate(
            flops=int(flops), transcendentals=0, bytes_accessed=int(bytes_accessed)),
    )(x_in, w_packed, b_packed)

    decoded = dec_pad if (b_pad == B and max_w == input_dim) else dec_pad[:B, :input_dim]
    latent = lat_pad[:B, :latent_dim]
    return decoded, latent


def init_params(key, input_dim, latent_dim):
    """Deterministic PyTorch-style init; weights returned as (in, out), biases (out,)."""
    h1, h2, h3 = input_dim // 2, input_dim // 4, input_dim // 8
    dims = [
        (input_dim, h1), (h1, h2), (h2, h3), (h3, latent_dim),   # encoder
        (latent_dim, h3), (h3, h2), (h2, h1), (h1, input_dim),   # decoder
    ]
    params = []
    for fan_in, fan_out in dims:
        key, kw, kb = jax.random.split(key, 3)
        bound = 1.0 / float(fan_in) ** 0.5
        w = jax.random.uniform(kw, (fan_in, fan_out), jnp.float32, -bound, bound)
        b = jax.random.uniform(kb, (fan_out,), jnp.float32, -bound, bound)
        params.append((w, b))
    return params


def reference_forward(x, params, matmul_dtype=jnp.float32):
    """Pure-JAX reference (with the same per-layer matmul-input cast)."""
    h = x
    latent = None
    for i, (w, b) in enumerate(params):
        y = jnp.dot(h.astype(matmul_dtype), w.astype(matmul_dtype),
                    preferred_element_type=jnp.float32) + b
        h = jnp.where(y > 0, y, LEAKY_ALPHA * y)
        if i == 3:
            latent = h
    return h, latent


if __name__ == "__main__":
    INPUT_DIM = 256
    LATENT_DIM = 16
    BATCH = 32

    key = jax.random.PRNGKey(0)
    key, kx = jax.random.split(key)
    x = jax.random.normal(kx, (BATCH, INPUT_DIM), jnp.float32)
    params = init_params(key, INPUT_DIM, LATENT_DIM)

    ref_dec, ref_lat = reference_forward(x, params)

    # 1) f32 matmul path -> 2-step grid (B=32, tb=16), exercises pipelining + megacore split.
    dec, lat = autoencoder_forward(x, params, matmul_dtype=jnp.float32)
    dec = jax.block_until_ready(dec)
    lat = jax.block_until_ready(lat)
    assert dec.shape == (BATCH, INPUT_DIM)
    assert lat.shape == (BATCH, LATENT_DIM)
    assert jnp.allclose(dec, ref_dec, atol=1e-4, rtol=1e-4)
    assert jnp.allclose(lat, ref_lat, atol=1e-4, rtol=1e-4)

    # 2) Default bf16 path: bf16 weights, bf16 end-to-end I/O, f32 MXU accumulation.
    dec16, lat16 = autoencoder_forward(x, params)
    dec16 = jax.block_until_ready(dec16)
    lat16 = jax.block_until_ready(lat16)
    ref_dec16, ref_lat16 = reference_forward(x, params, matmul_dtype=jnp.bfloat16)
    assert dec16.dtype == jnp.bfloat16 and lat16.dtype == jnp.bfloat16
    assert jnp.allclose(dec16.astype(jnp.float32), ref_dec16, atol=2e-2, rtol=2e-2)
    assert jnp.allclose(lat16.astype(jnp.float32), ref_lat16, atol=2e-2, rtol=2e-2)
    assert jnp.allclose(dec16.astype(jnp.float32), ref_dec, atol=5e-2, rtol=5e-2)

    # 3) Ragged batch (B not a multiple of 8) -> zero-padded rows, sliced off in wrapper.
    dec_r, lat_r = autoencoder_forward(x[:10], params, matmul_dtype=jnp.float32)
    dec_r = jax.block_until_ready(dec_r)
    lat_r = jax.block_until_ready(lat_r)
    assert dec_r.shape == (10, INPUT_DIM) and lat_r.shape == (10, LATENT_DIM)
    assert jnp.allclose(dec_r, ref_dec[:10], atol=1e-4, rtol=1e-4)
    assert jnp.allclose(lat_r, ref_lat[:10], atol=1e-4, rtol=1e-4)

    print("KERNEL_OK")
</pallas_src>

<mosaic_0001>
module attributes {stable_mosaic.version = 11 : i64} {
  func.func @autoencoder_kernel(%arg0: i32, %arg1: memref<16x256xf32, #tpu.memory_space<vmem>>, %arg2: memref<8x256x256xf32, #tpu.memory_space<vmem>>, %arg3: memref<8x256xf32, #tpu.memory_space<vmem>>, %arg4: memref<16x256xf32, #tpu.memory_space<vmem>>, %arg5: memref<16x128xf32, #tpu.memory_space<vmem>>) attributes {dimension_semantics = [#tpu.dimension_semantics<parallel>], iteration_bounds = array<i64: 2>, scalar_prefetch = 0 : i64, scratch_operands = 0 : i64, tpu.core_type = #tpu.core_type<tc>, window_params = [{transform_indices = @transform_0, window_bounds = array<i64: 16, 256>}, {pipeline_mode = #tpu.pipeline_mode<synchronous>, transform_indices = @transform_1, window_bounds = array<i64: 8, 256, 256>}, {pipeline_mode = #tpu.pipeline_mode<synchronous>, transform_indices = @transform_2, window_bounds = array<i64: 8, 256>}, {transform_indices = @transform_3, window_bounds = array<i64: 16, 256>}, {transform_indices = @transform_4, window_bounds = array<i64: 16, 128>}]} {
    %c0 = arith.constant 0 : index
    %c0_0 = arith.constant 0 : index
    %0 = vector.load %arg1[%c0, %c0_0] : memref<16x256xf32, #tpu.memory_space<vmem>>, vector<16x256xf32>
    %c0_1 = arith.constant 0 : index
    %c0_2 = arith.constant 0 : index
    %c0_3 = arith.constant 0 : index
    %1 = vector.load %arg2[%c0_1, %c0_2, %c0_3] : memref<8x256x256xf32, #tpu.memory_space<vmem>>, vector<1x256x256xf32>
    %2 = vector.shape_cast %1 : vector<1x256x256xf32> to vector<256x256xf32>
    %cst = arith.constant dense<0.000000e+00> : vector<16x256xf32>
    %3 = tpu.matmul %0, %2, %cst {dimension_numbers = #tpu.dot_dimension_numbers<[1], [0], [0], [1], [0, 0, 1, 1], [], []>} : vector<16x256xf32>, vector<256x256xf32>, vector<16x256xf32> -> vector<16x256xf32>
    %c0_4 = arith.constant 0 : index
    %c0_5 = arith.constant 0 : index
    %4 = vector.load %arg3[%c0_4, %c0_5] : memref<8x256xf32, #tpu.memory_space<vmem>>, vector<1x256xf32>
    %5 = vector.broadcast %4 : vector<1x256xf32> to vector<16x256xf32>
    %6 = arith.addf %3, %5 : vector<16x256xf32>
    %cst_6 = arith.constant 0.00999999977 : f32
    %7 = vector.broadcast %cst_6 : f32 to vector<16x256xf32>
    %8 = arith.mulf %7, %6 : vector<16x256xf32>
    %9 = arith.maximumf %6, %8 : vector<16x256xf32>
    %c1 = arith.constant 1 : index
    %c0_7 = arith.constant 0 : index
    %c0_8 = arith.constant 0 : index
    %10 = vector.load %arg2[%c1, %c0_7, %c0_8] : memref<8x256x256xf32, #tpu.memory_space<vmem>>, vector<1x256x256xf32>
    %11 = vector.shape_cast %10 : vector<1x256x256xf32> to vector<256x256xf32>
    %cst_9 = arith.constant dense<0.000000e+00> : vector<16x256xf32>
    %12 = tpu.matmul %9, %11, %cst_9 {dimension_numbers = #tpu.dot_dimension_numbers<[1], [0], [0], [1], [0, 0, 1, 1], [], []>} : vector<16x256xf32>, vector<256x256xf32>, vector<16x256xf32> -> vector<16x256xf32>
    %c1_10 = arith.constant 1 : index
    %c0_11 = arith.constant 0 : index
    %13 = vector.load %arg3[%c1_10, %c0_11] : memref<8x256xf32, #tpu.memory_space<vmem>>, vector<1x256xf32>
    %14 = vector.broadcast %13 : vector<1x256xf32> to vector<16x256xf32>
    %15 = arith.addf %12, %14 : vector<16x256xf32>
    %cst_12 = arith.constant 0.00999999977 : f32
    %16 = vector.broadcast %cst_12 : f32 to vector<16x256xf32>
    %17 = arith.mulf %16, %15 : vector<16x256xf32>
    %18 = arith.maximumf %15, %17 : vector<16x256xf32>
    %c2 = arith.constant 2 : index
    %c0_13 = arith.constant 0 : index
    %c0_14 = arith.constant 0 : index
    %19 = vector.load %arg2[%c2, %c0_13, %c0_14] : memref<8x256x256xf32, #tpu.memory_space<vmem>>, vector<1x256x256xf32>
    %20 = vector.shape_cast %19 : vector<1x256x256xf32> to vector<256x256xf32>
    %cst_15 = arith.constant dense<0.000000e+00> : vector<16x256xf32>
    %21 = tpu.matmul %18, %20, %cst_15 {dimension_numbers = #tpu.dot_dimension_numbers<[1], [0], [0], [1], [0, 0, 1, 1], [], []>} : vector<16x256xf32>, vector<256x256xf32>, vector<16x256xf32> -> vector<16x256xf32>
    %c2_16 = arith.constant 2 : index
    %c0_17 = arith.constant 0 : index
    %22 = vector.load %arg3[%c2_16, %c0_17] : memref<8x256xf32, #tpu.memory_space<vmem>>, vector<1x256xf32>
    %23 = vector.broadcast %22 : vector<1x256xf32> to vector<16x256xf32>
    %24 = arith.addf %21, %23 : vector<16x256xf32>
    %cst_18 = arith.constant 0.00999999977 : f32
    %25 = vector.broadcast %cst_18 : f32 to vector<16x256xf32>
    %26 = arith.mulf %25, %24 : vector<16x256xf32>
    %27 = arith.maximumf %24, %26 : vector<16x256xf32>
    %c3 = arith.constant 3 : index
    %c0_19 = arith.constant 0 : index
    %c0_20 = arith.constant 0 : index
    %28 = vector.load %arg2[%c3, %c0_19, %c0_20] : memref<8x256x256xf32, #tpu.memory_space<vmem>>, vector<1x256x256xf32>
    %29 = vector.shape_cast %28 : vector<1x256x256xf32> to vector<256x256xf32>
    %cst_21 = arith.constant dense<0.000000e+00> : vector<16x256xf32>
    %30 = tpu.matmul %27, %29, %cst_21 {dimension_numbers = #tpu.dot_dimension_numbers<[1], [0], [0], [1], [0, 0, 1, 1], [], []>} : vector<16x256xf32>, vector<256x256xf32>, vector<16x256xf32> -> vector<16x256xf32>
    %c3_22 = arith.constant 3 : index
    %c0_23 = arith.constant 0 : index
    %31 = vector.load %arg3[%c3_22, %c0_23] : memref<8x256xf32, #tpu.memory_space<vmem>>, vector<1x256xf32>
    %32 = vector.broadcast %31 : vector<1x256xf32> to vector<16x256xf32>
    %33 = arith.addf %30, %32 : vector<16x256xf32>
    %cst_24 = arith.constant 0.00999999977 : f32
    %34 = vector.broadcast %cst_24 : f32 to vector<16x256xf32>
    %35 = arith.mulf %34, %33 : vector<16x256xf32>
    %36 = arith.maximumf %33, %35 : vector<16x256xf32>
    %37 = vector.extract_strided_slice %36 {offsets = [0, 0], sizes = [16, 128], strides = [1, 1]} : vector<16x256xf32> to vector<16x128xf32>
    %c0_25 = arith.constant 0 : index
    %c0_26 = arith.constant 0 : index
    %38 = vector.load %arg5[%c0_25, %c0_26] : memref<16x128xf32, #tpu.memory_space<vmem>>, vector<16x128xf32>
    tpu.vector_store %arg5[%c0_25, %c0_26], %37 {strides = array<i32>} : memref<16x128xf32, #tpu.memory_space<vmem>>, vector<16x128xf32>,
    %c4 = arith.constant 4 : index
    %c0_27 = arith.constant 0 : index
    %c0_28 = arith.constant 0 : index
    %39 = vector.load %arg2[%c4, %c0_27, %c0_28] : memref<8x256x256xf32, #tpu.memory_space<vmem>>, vector<1x256x256xf32>
    %40 = vector.shape_cast %39 : vector<1x256x256xf32> to vector<256x256xf32>
    %cst_29 = arith.constant dense<0.000000e+00> : vector<16x256xf32>
    %41 = tpu.matmul %36, %40, %cst_29 {dimension_numbers = #tpu.dot_dimension_numbers<[1], [0], [0], [1], [0, 0, 1, 1], [], []>} : vector<16x256xf32>, vector<256x256xf32>, vector<16x256xf32> -> vector<16x256xf32>
    %c4_30 = arith.constant 4 : index
    %c0_31 = arith.constant 0 : index
    %42 = vector.load %arg3[%c4_30, %c0_31] : memref<8x256xf32, #tpu.memory_space<vmem>>, vector<1x256xf32>
    %43 = vector.broadcast %42 : vector<1x256xf32> to vector<16x256xf32>
    %44 = arith.addf %41, %43 : vector<16x256xf32>
    %cst_32 = arith.constant 0.00999999977 : f32
    %45 = vector.broadcast %cst_32 : f32 to vector<16x256xf32>
    %46 = arith.mulf %45, %44 : vector<16x256xf32>
    %47 = arith.maximumf %44, %46 : vector<16x256xf32>
    %c5 = arith.constant 5 : index
    %c0_33 = arith.constant 0 : index
    %c0_34 = arith.constant 0 : index
    %48 = vector.load %arg2[%c5, %c0_33, %c0_34] : memref<8x256x256xf32, #tpu.memory_space<vmem>>, vector<1x256x256xf32>
    %49 = vector.shape_cast %48 : vector<1x256x256xf32> to vector<256x256xf32>
    %cst_35 = arith.constant dense<0.000000e+00> : vector<16x256xf32>
    %50 = tpu.matmul %47, %49, %cst_35 {dimension_numbers = #tpu.dot_dimension_numbers<[1], [0], [0], [1], [0, 0, 1, 1], [], []>} : vector<16x256xf32>, vector<256x256xf32>, vector<16x256xf32> -> vector<16x256xf32>
    %c5_36 = arith.constant 5 : index
    %c0_37 = arith.constant 0 : index
    %51 = vector.load %arg3[%c5_36, %c0_37] : memref<8x256xf32, #tpu.memory_space<vmem>>, vector<1x256xf32>
    %52 = vector.broadcast %51 : vector<1x256xf32> to vector<16x256xf32>
    %53 = arith.addf %50, %52 : vector<16x256xf32>
    %cst_38 = arith.constant 0.00999999977 : f32
    %54 = vector.broadcast %cst_38 : f32 to vector<16x256xf32>
    %55 = arith.mulf %54, %53 : vector<16x256xf32>
    %56 = arith.maximumf %53, %55 : vector<16x256xf32>
    %c6 = arith.constant 6 : index
    %c0_39 = arith.constant 0 : index
    %c0_40 = arith.constant 0 : index
    %57 = vector.load %arg2[%c6, %c0_39, %c0_40] : memref<8x256x256xf32, #tpu.memory_space<vmem>>, vector<1x256x256xf32>
    %58 = vector.shape_cast %57 : vector<1x256x256xf32> to vector<256x256xf32>
    %cst_41 = arith.constant dense<0.000000e+00> : vector<16x256xf32>
    %59 = tpu.matmul %56, %58, %cst_41 {dimension_numbers = #tpu.dot_dimension_numbers<[1], [0], [0], [1], [0, 0, 1, 1], [], []>} : vector<16x256xf32>, vector<256x256xf32>, vector<16x256xf32> -> vector<16x256xf32>
    %c6_42 = arith.constant 6 : index
    %c0_43 = arith.constant 0 : index
    %60 = vector.load %arg3[%c6_42, %c0_43] : memref<8x256xf32, #tpu.memory_space<vmem>>, vector<1x256xf32>
    %61 = vector.broadcast %60 : vector<1x256xf32> to vector<16x256xf32>
    %62 = arith.addf %59, %61 : vector<16x256xf32>
    %cst_44 = arith.constant 0.00999999977 : f32
    %63 = vector.broadcast %cst_44 : f32 to vector<16x256xf32>
    %64 = arith.mulf %63, %62 : vector<16x256xf32>
    %65 = arith.maximumf %62, %64 : vector<16x256xf32>
    %c7 = arith.constant 7 : index
    %c0_45 = arith.constant 0 : index
    %c0_46 = arith.constant 0 : index
    %66 = vector.load %arg2[%c7, %c0_45, %c0_46] : memref<8x256x256xf32, #tpu.memory_space<vmem>>, vector<1x256x256xf32>
    %67 = vector.shape_cast %66 : vector<1x256x256xf32> to vector<256x256xf32>
    %cst_47 = arith.constant dense<0.000000e+00> : vector<16x256xf32>
    %68 = tpu.matmul %65, %67, %cst_47 {dimension_numbers = #tpu.dot_dimension_numbers<[1], [0], [0], [1], [0, 0, 1, 1], [], []>} : vector<16x256xf32>, vector<256x256xf32>, vector<16x256xf32> -> vector<16x256xf32>
    %c7_48 = arith.constant 7 : index
    %c0_49 = arith.constant 0 : index
    %69 = vector.load %arg3[%c7_48, %c0_49] : memref<8x256xf32, #tpu.memory_space<vmem>>, vector<1x256xf32>
    %70 = vector.broadcast %69 : vector<1x256xf32> to vector<16x256xf32>
    %71 = arith.addf %68, %70 : vector<16x256xf32>
    %cst_50 = arith.constant 0.00999999977 : f32
    %72 = vector.broadcast %cst_50 : f32 to vector<16x256xf32>
    %73 = arith.mulf %72, %71 : vector<16x256xf32>
    %74 = arith.maximumf %71, %73 : vector<16x256xf32>
    %c0_51 = arith.constant 0 : index
    %c0_52 = arith.constant 0 : index
    %75 = vector.load %arg4[%c0_51, %c0_52] : memref<16x256xf32, #tpu.memory_space<vmem>>, vector<16x256xf32>
    tpu.vector_store %arg4[%c0_51, %c0_52], %74 {strides = array<i32>} : memref<16x256xf32, #tpu.memory_space<vmem>>, vector<16x256xf32>,
    return
  }
  func.func @transform_0(%arg0: i32) -> (i32, i32) {
    %c0_i32 = arith.constant 0 : i32
    %c0_i32_0 = arith.constant 0 : i32
    return %arg0, %c0_i32 : i32, i32
  }
  func.func @transform_1(%arg0: i32) -> (i32, i32, i32) {
    %c0_i32 = arith.constant 0 : i32
    %c0_i32_0 = arith.constant 0 : i32
    %c0_i32_1 = arith.constant 0 : i32
    %c0_i32_2 = arith.constant 0 : i32
    return %c0_i32, %c0_i32_0, %c0_i32_1 : i32, i32, i32
  }
  func.func @transform_2(%arg0: i32) -> (i32, i32) {
    %c0_i32 = arith.constant 0 : i32
    %c0_i32_0 = arith.constant 0 : i32
    %c0_i32_1 = arith.constant 0 : i32
    return %c0_i32, %c0_i32_0 : i32, i32
  }
  func.func @transform_3(%arg0: i32) -> (i32, i32) {
    %c0_i32 = arith.constant 0 : i32
    %c0_i32_0 = arith.constant 0 : i32
    return %arg0, %c0_i32 : i32, i32
  }
  func.func @transform_4(%arg0: i32) -> (i32, i32) {
    %c0_i32 = arith.constant 0 : i32
    %c0_i32_0 = arith.constant 0 : i32
    return %arg0, %c0_i32 : i32, i32
  }
}

</mosaic_0001>

<bundles_post_ra>
// kernel: tpu_custom_call.1
= control target key start
LH: loop header
LB: loop body
LE: loop exit
PB: predicated region body
PF: predicated region fallthrough
CT: control target
= control target key end

     0   :  { %10 = vsyncpa [#allocation3], 0  ;;  %s2883_s0 = inlined_call_operand.hbm [shape: f32[32,256], index: 0, kind: input, shape index: {}]   ;;  %s2884_s1 = inlined_call_operand.hbm [shape: f32[8,256,256], index: 1, kind: input, shape index: {}]   ;;  %s2885_s2 = inlined_call_operand.hbm [shape: f32[8,256], index: 2, kind: input, shape index: {}]   ;;  %s2886_s3 = inlined_call_operand.hbm [shape: f32[32,256], index: 3, kind: output, shape index: {0}]   ;;  %s2887_s4 = inlined_call_operand.hbm [shape: f32[32,128], index: 4, kind: output, shape index: {1}]  }
   0x1   :  { %12 = vsyncpa [#allocation3 + $0x1], 0 }
   0x2   :  { %13 = vsyncpa [#allocation6], 0 }
   0x3   :  { %14 = vsyncpa [#allocation4], 0 }
   0x4   :  { %16 = vsyncpa [#allocation4 + $0x1], 0 }
   0x5   :  { %17 = vsyncpa [#allocation10], 0 }
   0x6   :  { %19 = vsyncpa [#allocation10 + $0x1], 0  ;;  %s2575_s15 = smov 0   ;;  %s2577_s16 = smov 0  }
   0x7   :  { %s2579_s17 = smov 0   ;;  %s2581_s18 = smov 0  }
   0x8 LB: > { %s2596_s19 = sadd.s32 4294967295, %s2537_s18   ;;  %s1730_s20 = sadd.s32 4294967294, %s2537_s18   ;;  %s2537_s18 = sphi %s2581_s18, %s2907_s18   ;;  %s2533_s17 = sphi %s2579_s17, %s2906_s17   ;;  %s2529_s16 = sphi %s2577_s16, %s2905_s16   ;;  %s2525_s15 = sphi %s2575_s15, %s2904_s15  }
   0x9   : > { %p45_p0 = scmp.ne.s32.totalorder %s2529_s16, %s2525_s15  ;;  %p2888_p1 = scmp.eq.s32.totalorder %s2596_s19, 0 }
   0xa   : > { %p117_p3 = scmp.eq.s32.totalorder %s1730_s20, 1  ;;  %p1731_p5 = scmp.ge.s32.totalorder %s2537_s18, 1 }
   0xb   : > { %p2605_p4 = por %p2888_p1, %p45_p0  ;;  %p150_p7 = scmp.lt.s32.totalorder %s2537_s18, 3 }
   0xc   : > { %p2610_p6 = por %p117_p3, %p45_p0  ;;  %s2539_s24 = smov [#allocation5]  }
   0xd   : > { %s2891_s21 = scalar_select %p2605_p4, 1, 0 }
   0xe   : > { %s2892_s22 = scalar_select %p2610_p6, 1, 0 }
   0xf   : > { %p2615_p8 = pnand %p1731_p5, %p150_p7  ;;  %s162_s25 = sshll.u32 %s2539_s24, 4  ;;  %s2619_s25 = int_to_ptr.vmem [resolvable:$true] %s162_s25 }
  0x10   : > { %s2540_s27 = smov [#allocation7]   ;;  %s2349_s5 = scalar_lea.hbm %s2884_s1, 65536 }
  0x11   : > { %p2285_p9 = pneg %p2615_p8  ;;  %s176_s28 = sshll.u32 %s2540_s27, 4  ;;  %s2630_s28 = int_to_ptr.vmem [resolvable:$true] %s176_s28 }
  0x12   : > { %p2350_p12 = scmp.ne.s32.totalorder %s2884_s1, %s2349_s5  ;;  %p2356_p5 = scmp.lt.u32.totalorder %s2349_s5, %s2884_s1 }
  0x13   : > { %p2626_p11 = pnand %p2285_p9, %p2888_p1 }
  0x15   : > { %p2351_p13 = pneg %p2626_p11 }
  0x17   : > { %p2352_p0 = pnand %p2351_p13, %p2350_p12 }
  0x19   : > { %p2353_p3 = pneg %p2352_p0 }
  0x1b   : > { %p2358_p7 = pnand %p2356_p5, %p2353_p3 }
  0x1d   : > { %2361 = shalt.err (!%p2358_p7)
}
  0x1e   : > { %s2362_s10 = scalar_lea.vmem %s2619_s25, 65536  ;;  %p2370_p2 = scmp.lt.s32.totalorder %s2619_s25, %s2619_s25 }
  0x1f   : > { %p2363_p9 = scmp.ne.s32.totalorder %s2619_s25, %s2362_s10  ;;  %p2371_p12 = scmp.lt.s32.totalorder %s2362_s10, %s2362_s10 }
  0x21   : > { %p2365_p10 = pnand %p2363_p9, %p2351_p13  ;;  %p2372_p0 = por %p2371_p12, %p2370_p2 }
  0x23   : > { %p2366_p1 = pneg %p2365_p10 }
  0x25   : > { %p2373_p6 = pnand %p2372_p0, %p2366_p1 }
  0x27   : > { %2376 = shalt.err (!%p2373_p6)
}
  0x28   : > { %s2541_s11 = smov 256   ;;  %s2542_s12 = smov 16  }
  0x29   : > { %2288 = dma.hbm_to_vmem [thread:$0]  (!%p2626_p11), %s2884_s1, 65536, %s2619_s25, [#allocation6], %s2541_s11, %s2541_s11, %s2542_s12  }
  0x2a   : > { %s2377_s27 = scalar_lea.hbm %s2885_s2, 256 }
  0x2b   : > { %p2378_p1 = scmp.ne.s32.totalorder %s2885_s2, %s2377_s27  ;;  %p2384_p10 = scmp.lt.u32.totalorder %s2377_s27, %s2885_s2 }
  0x2d   : > { %p2380_p2 = pnand %p2378_p1, %p2351_p13 }
  0x2f   : > { %p2381_p6 = pneg %p2380_p2 }
  0x31   : > { %p2386_p3 = pnand %p2384_p10, %p2381_p6 }
  0x33   : > { %2389 = shalt.err (!%p2386_p3)
}
  0x34   : > { %s2390_s25 = scalar_lea.vmem %s2630_s28, 256  ;;  %p2398_p12 = scmp.lt.s32.totalorder %s2630_s28, %s2630_s28 }
  0x35   : > { %p2391_p5 = scmp.ne.s32.totalorder %s2630_s28, %s2390_s25  ;;  %p2399_p0 = scmp.lt.s32.totalorder %s2390_s25, %s2390_s25 }
  0x37   : > { %p2393_p7 = pnand %p2391_p5, %p2351_p13  ;;  %p2400_p1 = por %p2399_p0, %p2398_p12 }
  0x39   : > { %p2394_p9 = pneg %p2393_p7 }
  0x3b   : > { %p2401_p2 = pnand %p2400_p1, %p2394_p9 }
  0x3d   : > { %2404 = shalt.err (!%p2401_p2)
}
  0x3e   : > { %2291 = dma.hbm_to_vmem [thread:$0]  (!%p2626_p11), %s2885_s2, 256, %s2630_s28, [#allocation6]  }
  0x3f   : > { %s2688_s9 = sadd.s32 1, %s2537_s18   ;;  %s32_s26 = sadd.s32 1, %s2533_s17 }
  0x40   : > { %s29_s10 = ssub.s32 %s2537_s18, %s2688_s9  ;;  %p39_p13 = scmp.ne.s32.totalorder %s2533_s17, %s2529_s16 }
  0x41   : > { %p30_p6 = scmp.eq.s32.totalorder %s29_s10, 0  ;;  %p40_p10 = scmp.eq.s32.totalorder %s2537_s18, 0 }
  0x42   : > { %p2895_p3 = scmp.eq.s32.totalorder %s2596_s19, 1  ;;  %p2305_p7 = scmp.lt.s32.totalorder %s2537_s18, 2 }
  0x43   : > { %s2704_s14 = scalar_select %p30_p6, %s2533_s17, %s32_s26  }
  0x44   : > { %p2698_p5 = por %p2895_p3, %p39_p13  ;;  %p41_p9 = por %p40_p10, %p39_p13 }
  0x45   : > { %s187_s20 = sand.u32 1, %s2533_s17   ;;  %s1755_s28 = sshll.u32 %s2537_s18, 9 }
  0x46   : > { %s2896_s13 = scalar_select %p2698_p5, 1, 0 }
  0x47   : > { %s1735_s24 = sshll.u32 %s187_s20, 5  ;;  %s2711_s30 = scalar_lea.hbm %s2883_s0, %s1755_s28 }
  0x48   : > { %s191_s5 = scalar_lea.vmem [#allocation2], %s1735_s24  ;;  %p2715_p11 = pnand %p2305_p7, %p41_p9 }
  0x49   : > { %s199_s6 = sshll.u32 %s191_s5, 4  ;;  %s2719_s7 = scalar_lea.sflag [#allocation3], %s187_s20  ;;  %s2713_s6 = int_to_ptr.vmem [resolvable:$true] %s199_s6 }
  0x4a   : > { %s2405_s8 = scalar_lea.hbm %s2711_s30, 512  ;;  %p2407_p0 = pneg %p2715_p11 }
  0x4b   : > { %p2406_p12 = scmp.ne.s32.totalorder %s2711_s30, %s2405_s8  ;;  %s2410_s24 = scalar_lea.hbm %s2883_s0, 1024 }
  0x4c   : > { %p2411_p13 = scmp.lt.u32.totalorder %s2711_s30, %s2883_s0  ;;  %p2412_p6 = scmp.lt.u32.totalorder %s2410_s24, %s2405_s8 }
  0x4d   : > { %p2408_p1 = pnand %p2407_p0, %p2406_p12  ;;  %p2414_p3 = scmp.lt.u32.totalorder %s2405_s8, %s2711_s30 }
  0x4e   : > { %p2413_p10 = por %p2412_p6, %p2411_p13 }
  0x4f   : > { %p2409_p2 = pneg %p2408_p1 }
  0x50   : > { %p2415_p7 = por %p2414_p3, %p2413_p10 }
  0x52   : > { %p2416_p9 = pnand %p2415_p7, %p2409_p2 }
  0x54   : > { %2419 = shalt.err (!%p2416_p9)
}
  0x55   : > { %s2420_s20 = scalar_lea.vmem %s2713_s6, 512  ;;  %s2543_s29 = smov [#allocation2]  }
  0x56   : > { %p2421_p12 = scmp.ne.s32.totalorder %s2713_s6, %s2420_s20  ;;  %s2425_s5 = sshll.u32 %s2543_s29, 4  ;;  %s2426_s5 = int_to_ptr.vmem [resolvable:$false] %s2425_s5 }
  0x57   : > { %s2427_s26 = scalar_lea.vmem %s2426_s5, 1024  ;;  %p2428_p4 = scmp.lt.s32.totalorder %s2713_s6, %s2426_s5 }
  0x58   : > { %p2423_p1 = pnand %p2421_p12, %p2407_p0  ;;  %p2429_p13 = scmp.lt.s32.totalorder %s2427_s26, %s2420_s20 }
  0x5a   : > { %p2424_p5 = pneg %p2423_p1  ;;  %p2430_p6 = por %p2429_p13, %p2428_p4 }
  0x5c   : > { %p2431_p10 = pnand %p2430_p6, %p2424_p5 }
  0x5e   : > { %2434 = shalt.err (!%p2431_p10)
}
  0x5f   : > { %2295 = dma.hbm_to_vmem [thread:$0]  (!%p2715_p11), %s2711_s30, 512, %s2713_s6, %s2719_s7, %s2541_s11, %s2541_s11, %s2542_s12  }
  0x60   : > { %211 = sbr.rel (%p2615_p8) target bundleno = 1952 (0x7a0), region = 32  ;;  %s2753_s8 = sand.u32 (!%p2615_p8), 1, %s2529_s16  }
  0x61   : > { %s1740_s10 = sshll.u32 (!%p2615_p8), %s2753_s8, 5  ;;  %s214_s24 = scalar_lea.sflag (!%p2615_p8), [#allocation3], %s2753_s8 }
  0x62   : > { %s2759_s25 = scalar_lea.vmem (!%p2615_p8), [#allocation2], %s1740_s10  ;;  %p2898_p4 = scmp.ne.s32.totalorder (!%p2615_p8), %s2891_s21, 0 }
  0x67   : > { %2508 = dma.done.wait (%p2898_p4), %s214_s24, 512  }
  0x68   : > { %2510 = vsyncadd (%p2898_p4), %s214_s24, 4294966784  ;;  %p2899_p5 = scmp.eq.s32.totalorder %s2596_s19, 0 }
  0x6a   : > { %2512 = dma.done.wait (%p2899_p5), [#allocation6], 65792   ;;  %p2900_p8 = pmov %p2899_p5 }
  0x6b   : > { %v263_v0 = vld [vmem:[#allocation5 + $0x8] sm:$0xff]  ;;  %v265_v1 = vld [vmem:[#allocation5 + $0x18] sm:$0xff]  ;;  %v262_v2 = vld [vmem:[#allocation5] sm:$0xff]  ;;  %s1744_s21 = sshll.u32 %s2753_s8, 4  ;;  %s1758_s12 = sshll.u32 %s2596_s19, 8 }
  0x6c   : > { %2514 = vsyncadd (%p2900_p8), [#allocation6], 4294901504  ;;  %v1759_v3 = vpack.c.bf16 %v265_v1, %v263_v0  ;;  %v264_v4 = vld [vmem:[#allocation5 + $0x10] sm:$0xff]  ;;  %v267_v5 = vld [vmem:[#allocation5 + $0x28] sm:$0xff]  ;;  %s2786_s23 = scalar_lea.vmem [#allocation9], %s1744_s21  ;;  %s2803_s7 = scalar_lea.hbm %s2887_s4, %s1758_s12 }
  0x6d   : > { %v269_v6 = vld [vmem:[#allocation5 + $0x38] sm:$0xff]  ;;  %v1761_v7 = vpack.c.bf16 %v264_v4, %v262_v2  ;;  %v266_v9 = vld [vmem:[#allocation5 + $0x20] sm:$0xff]  ;;  %v268_v10 = vld [vmem:[#allocation5 + $0x30] sm:$0xff]  ;;  %s1606_s11 = sshll.u32 %s2786_s23, 4  ;;  %s1576_s28 = scalar_lea.sflag [#allocation10], %s2753_s8  ;;  %s2798_s11 = int_to_ptr.vmem [resolvable:$true] %s1606_s11 }
  0x6e   : > { %v1763_v8 = vpack.c.bf16 %v269_v6, %v267_v5  ;;  %v271_v11 = vld [vmem:[#allocation5 + $0x48] sm:$0xff]  ;;  %1760 = vmatprep.subr.bf16.mxu0 %v1759_v3  ;;  %v273_v12 = vld [vmem:[#allocation5 + $0x58] sm:$0xff]  ;;  %v1765_v13 = vpack.c.bf16 %v268_v10, %v266_v9  ;;  %v270_v15 = vld [vmem:[#allocation5 + $0x40] sm:$0xff]  ;;  %s2435_s27 = scalar_lea.vmem %s2798_s11, 256  ;;  %p2901_p0 = scmp.ne.s32.totalorder %s2896_s13, 0 }
  0x6f   : > { %1762 = vmatpush1.bf16.msra.mxu0 %v1761_v7  ;;  %v1767_v14 = vpack.c.bf16 %v273_v12, %v271_v11  ;;  %v272_v16 = vld [vmem:[#allocation5 + $0x50] sm:$0xff]  ;;  %v275_v17 = vld [vmem:[#allocation5 + $0x68] sm:$0xff]  ;;  %v277_v18 = vld [vmem:[#allocation5 + $0x78] sm:$0xff]  ;;  %p2436_p11 = scmp.ne.s32.totalorder %s2798_s11, %s2435_s27  ;;  %s2544_s20 = smov [#allocation9]  }
  0x70   : > { %1764 = vmatprep.subr.bf16.mxu0 %v1763_v8  ;;  %v1769_v19 = vpack.c.bf16 %v272_v16, %v270_v15  ;;  %v1771_v20 = vpack.c.bf16 %v277_v18, %v275_v17  ;;  %v274_v21 = vld [vmem:[#allocation5 + $0x60] sm:$0xff]  ;;  %v276_v22 = vld [vmem:[#allocation5 + $0x70] sm:$0xff]  ;;  %v279_v23 = vld [vmem:[#allocation5 + $0x88] sm:$0xff]  ;;  %s2439_s29 = sshll.u32 %s2544_s20, 4  ;;  %s2440_s29 = int_to_ptr.vmem [resolvable:$false] %s2439_s29 }
  0x71   : > { %v281_v24 = vld [vmem:[#allocation5 + $0x98] sm:$0xff]  ;;  %v1773_v25 = vpack.c.bf16 %v276_v22, %v274_v21  ;;  %v278_v27 = vld [vmem:[#allocation5 + $0x80] sm:$0xff]  ;;  %v280_v28 = vld [vmem:[#allocation5 + $0x90] sm:$0xff]  ;;  %p2437_p2 = pnand %p2436_p11, %p2901_p0  ;;  %s2441_s5 = scalar_lea.vmem %s2440_s29, 512 }
  0x72   : > { %v1775_v26 = vpack.c.bf16 %v281_v24, %v279_v23  ;;  %v283_v29 = vld [vmem:[#allocation5 + $0xa8] sm:$0xff]  ;;  %v285_v30 = vld [vmem:[#allocation5 + $0xb8] sm:$0xff]  ;;  %v1777_v31 = vpack.c.bf16 %v280_v28, %v278_v27  ;;  %v282_v33 = vld [vmem:[#allocation5 + $0xa0] sm:$0xff]  ;;  %p2442_p7 = scmp.lt.s32.totalorder %s2798_s11, %s2440_s29  ;;  %p2443_p9 = scmp.lt.s32.totalorder %s2441_s5, %s2435_s27 }
  0x73   : > { %1766 = vmatpush1.bf16.msra.mxu0 %v1765_v13  ;;  %v1779_v32 = vpack.c.bf16 %v285_v30, %v283_v29  ;;  %v284_v34 = vld [vmem:[#allocation5 + $0xb0] sm:$0xff]  ;;  %v287_v35 = vld [vmem:[#allocation5 + $0xc8] sm:$0xff]  ;;  %v289_v36 = vld [vmem:[#allocation5 + $0xd8] sm:$0xff]  ;;  %p2438_p3 = pneg %p2437_p2 }
  0x74   : > { %1768 = vmatprep.subr.bf16.mxu0 %v1767_v14  ;;  %v1781_v37 = vpack.c.bf16 %v284_v34, %v282_v33  ;;  %v1783_v38 = vpack.c.bf16 %v289_v36, %v287_v35  ;;  %v286_v39 = vld [vmem:[#allocation5 + $0xc0] sm:$0xff]  ;;  %v288_v40 = vld [vmem:[#allocation5 + $0xd0] sm:$0xff]  ;;  %v259_v41 = vld [vmem:[%s2759_s25 + $0x8] sm:$0xff]  ;;  %p2444_p12 = por %p2443_p9, %p2442_p7 }
  0x75   : > { %v291_v42 = vld [vmem:[#allocation5 + $0xe8] sm:$0xff]  ;;  %v293_v43 = vld [vmem:[#allocation5 + $0xf8] sm:$0xff]  ;;  %402 = vmatprep.mubr.f32.mxu0 %v259_v41  ;;  %v290_v45 = vld [vmem:[#allocation5 + $0xe0] sm:$0xff]  ;;  %v1785_v50 = vpack.c.bf16 %v288_v40, %v286_v39 }
  0x76   : > { %v425_v44 = vld [vmem:[#allocation5 + $0x208] sm:$0xff]  ;;  %v292_v46 = vld [vmem:[#allocation5 + $0xf0] sm:$0xff]  ;;  %v427_v47 = vld [vmem:[#allocation5 + $0x218] sm:$0xff]  ;;  %v1787_v56 = vpack.c.bf16 %v293_v43, %v291_v42  ;;  %p2445_p1 = pnand %p2444_p12, %p2438_p3 }
  0x77   : > { %1770 = vmatpush1.bf16.msra.mxu0 %v1769_v19  ;;  %v424_v48 = vld [vmem:[#allocation5 + $0x200] sm:$0xff]  ;;  %v426_v49 = vld [vmem:[#allocation5 + $0x210] sm:$0xff]  ;;  %v1823_v51 = vpack.c.bf16 %v427_v47, %v425_v44  ;;  %v429_v53 = vld [vmem:[#allocation5 + $0x228] sm:$0xff]  ;;  %v1789_v0 = vpack.c.bf16 %v292_v46, %v290_v45 }
  0x78   : > { %1772 = vmatprep.subr.bf16.mxu0 %v1771_v20  ;;  %v1825_v52 = vpack.c.bf16 %v426_v49, %v424_v48  ;;  %v431_v54 = vld [vmem:[#allocation5 + $0x238] sm:$0xff]  ;;  %v428_v55 = vld [vmem:[#allocation5 + $0x220] sm:$0xff]  ;;  %v430_v58 = vld [vmem:[#allocation5 + $0x230] sm:$0xff] }
  0x79   : > { %v1827_v57 = vpack.c.bf16 %v431_v54, %v429_v53  ;;  %v433_v59 = vld [vmem:[#allocation5 + $0x248] sm:$0xff]  ;;  %v435_v60 = vld [vmem:[#allocation5 + $0x258] sm:$0xff]  ;;  %1824 = vmatprep.subr.bf16.mxu1 %v1823_v51  ;;  %v1829_v63 = vpack.c.bf16 %v430_v58, %v428_v55  ;;  %v294_v1 = vld [vmem:[#allocation5 + $0x100] sm:$0xff] }
  0x7a   : > { %v295_v61 = vld [vmem:[#allocation5 + $0x108] sm:$0xff]  ;;  %v297_v62 = vld [vmem:[#allocation5 + $0x118] sm:$0xff]  ;;  %1826 = vmatpush1.bf16.msra.mxu1 %v1825_v52  ;;  %v1831_v2 = vpack.c.bf16 %v435_v60, %v433_v59  ;;  %v432_v3 = vld [vmem:[#allocation5 + $0x240] sm:$0xff] }
  0x7b   : > { %1774 = vmatpush1.bf16.msra.mxu0 %v1773_v25  ;;  %1828 = vmatprep.subr.bf16.mxu1 %v1827_v57  ;;  %v434_v4 = vld [vmem:[#allocation5 + $0x250] sm:$0xff]  ;;  %v1791_v5 = vpack.c.bf16 %v297_v62, %v295_v61  ;;  %v437_v7 = vld [vmem:[#allocation5 + $0x268] sm:$0xff]  ;;  %v439_v8 = vld [vmem:[#allocation5 + $0x278] sm:$0xff] }
  0x7c   : > { %1776 = vmatprep.subr.bf16.mxu0 %v1775_v26  ;;  %v296_v6 = vld [vmem:[#allocation5 + $0x110] sm:$0xff]  ;;  %v299_v9 = vld [vmem:[#allocation5 + $0x128] sm:$0xff]  ;;  %v301_v10 = vld [vmem:[#allocation5 + $0x138] sm:$0xff]  ;;  %v1833_v11 = vpack.c.bf16 %v434_v4, %v432_v3  ;;  %v1835_v14 = vpack.c.bf16 %v439_v8, %v437_v7 }
  0x7d   : > { %v1793_v12 = vpack.c.bf16 %v296_v6, %v294_v1  ;;  %v298_v13 = vld [vmem:[#allocation5 + $0x120] sm:$0xff]  ;;  %v438_v16 = vld [vmem:[#allocation5 + $0x270] sm:$0xff]  ;;  %v1795_v17 = vpack.c.bf16 %v301_v10, %v299_v9  ;;  %v441_v19 = vld [vmem:[#allocation5 + $0x288] sm:$0xff] }
  0x7e   : > { %1830 = vmatpush1.bf16.msra.mxu1 %v1829_v63  ;;  %v436_v15 = vld [vmem:[#allocation5 + $0x260] sm:$0xff]  ;;  %v300_v18 = vld [vmem:[#allocation5 + $0x130] sm:$0xff]  ;;  %v443_v20 = vld [vmem:[#allocation5 + $0x298] sm:$0xff] }
  0x7f   : > { %1778 = vmatpush1.bf16.msra.mxu0 %v1777_v31  ;;  %1832 = vmatprep.subr.bf16.mxu1 %v1831_v2  ;;  %v303_v21 = vld [vmem:[#allocation5 + $0x148] sm:$0xff]  ;;  %v305_v22 = vld [vmem:[#allocation5 + $0x158] sm:$0xff]  ;;  %v1837_v23 = vpack.c.bf16 %v438_v16, %v436_v15  ;;  %v1797_v24 = vpack.c.bf16 %v300_v18, %v298_v13  ;;  %v302_v25 = vld [vmem:[#allocation5 + $0x140] sm:$0xff]  ;;  %v1839_v26 = vpack.c.bf16 %v443_v20, %v441_v19 }
  0x80   : > { %1780 = vmatprep.subr.bf16.mxu0 %v1779_v32  ;;  %v440_v27 = vld [vmem:[#allocation5 + $0x280] sm:$0xff]  ;;  %v442_v28 = vld [vmem:[#allocation5 + $0x290] sm:$0xff]  ;;  %v1799_v29 = vpack.c.bf16 %v305_v22, %v303_v21  ;;  %v445_v31 = vld [vmem:[#allocation5 + $0x2a8] sm:$0xff] }
  0x81   : > { %v304_v30 = vld [vmem:[#allocation5 + $0x150] sm:$0xff]  ;;  %v447_v32 = vld [vmem:[#allocation5 + $0x2b8] sm:$0xff]  ;;  %v307_v33 = vld [vmem:[#allocation5 + $0x168] sm:$0xff]  ;;  %v1841_v35 = vpack.c.bf16 %v442_v28, %v440_v27 }
  0x82   : > { %1834 = vmatpush1.bf16.msra.mxu1 %v1833_v11  ;;  %v309_v34 = vld [vmem:[#allocation5 + $0x178] sm:$0xff]  ;;  %v1801_v36 = vpack.c.bf16 %v304_v30, %v302_v25  ;;  %v444_v39 = vld [vmem:[#allocation5 + $0x2a0] sm:$0xff]  ;;  %v446_v40 = vld [vmem:[#allocation5 + $0x2b0] sm:$0xff] }
  0x83   : > { %1782 = vmatpush1.bf16.msra.mxu0 %v1781_v37  ;;  %1836 = vmatprep.subr.bf16.mxu1 %v1835_v14  ;;  %v306_v37 = vld [vmem:[#allocation5 + $0x160] sm:$0xff]  ;;  %v1803_v41 = vpack.c.bf16 %v309_v34, %v307_v33  ;;  %v308_v42 = vld [vmem:[#allocation5 + $0x170] sm:$0xff]  ;;  %v449_v43 = vld [vmem:[#allocation5 + $0x2c8] sm:$0xff]  ;;  %v1845_v47 = vpack.c.bf16 %v446_v40, %v444_v39 }
  0x84   : > { %1784 = vmatprep.subr.bf16.mxu0 %v1783_v38  ;;  %v1843_v38 = vpack.c.bf16 %v447_v32, %v445_v31  ;;  %v451_v44 = vld [vmem:[#allocation5 + $0x2d8] sm:$0xff]  ;;  %v311_v45 = vld [vmem:[#allocation5 + $0x188] sm:$0xff]  ;;  %v1805_v48 = vpack.c.bf16 %v308_v42, %v306_v37  ;;  %v310_v49 = vld [vmem:[#allocation5 + $0x180] sm:$0xff] }
  0x85   : > { %v313_v46 = vld [vmem:[#allocation5 + $0x198] sm:$0xff]  ;;  %v448_v51 = vld [vmem:[#allocation5 + $0x2c0] sm:$0xff]  ;;  %v450_v52 = vld [vmem:[#allocation5 + $0x2d0] sm:$0xff] }
  0x86   : > { %1838 = vmatpush1.bf16.msra.mxu1 %v1837_v23  ;;  %v1807_v53 = vpack.c.bf16 %v313_v46, %v311_v45  ;;  %v312_v54 = vld [vmem:[#allocation5 + $0x190] sm:$0xff]  ;;  %v453_v55 = vld [vmem:[#allocation5 + $0x2e8] sm:$0xff]  ;;  %v317_v58 = vld [vmem:[#allocation5 + $0x1b8] sm:$0xff]  ;;  %v1849_v59 = vpack.c.bf16 %v450_v52, %v448_v51 }
  0x87   : > { %1786 = vmatpush1.bf16.msra.mxu0 %v1785_v50  ;;  %1840 = vmatprep.subr.bf16.mxu1 %v1839_v26  ;;  %v1847_v50 = vpack.c.bf16 %v451_v44, %v449_v43  ;;  %v315_v57 = vld [vmem:[#allocation5 + $0x1a8] sm:$0xff]  ;;  %v1809_v60 = vpack.c.bf16 %v312_v54, %v310_v49  ;;  %v314_v61 = vld [vmem:[#allocation5 + $0x1a0] sm:$0xff]  ;;  %v316_v2 = vld [vmem:[#allocation5 + $0x1b0] sm:$0xff] }
  0x88   : > { %1788 = vmatprep.subr.bf16.mxu0 %v1787_v56  ;;  %v455_v56 = vld [vmem:[#allocation5 + $0x2f8] sm:$0xff]  ;;  %v452_v63 = vld [vmem:[#allocation5 + $0x2e0] sm:$0xff]  ;;  %v1811_v1 = vpack.c.bf16 %v317_v58, %v315_v57  ;;  %v457_v3 = vld [vmem:[#allocation5 + $0x308] sm:$0xff]  ;;  %v1813_v8 = vpack.c.bf16 %v316_v2, %v314_v61 }
  0x89   : > { %v1851_v62 = vpack.c.bf16 %v455_v56, %v453_v55  ;;  %v459_v4 = vld [vmem:[#allocation5 + $0x318] sm:$0xff]  ;;  %v318_v9 = vld [vmem:[#allocation5 + $0x1c0] sm:$0xff]  ;;  %v320_v14 = vld [vmem:[#allocation5 + $0x1d0] sm:$0xff] }
  0x8a   : > { %1842 = vmatpush1.bf16.msra.mxu1 %v1841_v35  ;;  %v321_v6 = vld [vmem:[#allocation5 + $0x1d8] sm:$0xff]  ;;  %v1855_v10 = vpack.c.bf16 %v459_v4, %v457_v3  ;;  %v456_v11 = vld [vmem:[#allocation5 + $0x300] sm:$0xff]  ;;  %v461_v15 = vld [vmem:[#allocation5 + $0x328] sm:$0xff]  ;;  %v1817_v20 = vpack.c.bf16 %v320_v14, %v318_v9 }
  0x8b   : > { %1790 = vmatpush1.bf16.msra.mxu0 %v1789_v0  ;;  %1844 = vmatprep.subr.bf16.mxu1 %v1843_v38  ;;  %v454_v0 = vld [vmem:[#allocation5 + $0x2f0] sm:$0xff]  ;;  %v463_v16 = vld [vmem:[#allocation5 + $0x338] sm:$0xff]  ;;  %v322_v21 = vld [vmem:[#allocation5 + $0x1e0] sm:$0xff] }
  0x8c   : > { %1792 = vmatprep.subr.bf16.mxu0 %v1791_v5  ;;  %v319_v5 = vld [vmem:[#allocation5 + $0x1c8] sm:$0xff]  ;;  %v1853_v7 = vpack.c.bf16 %v454_v0, %v452_v63  ;;  %v325_v18 = vld [vmem:[#allocation5 + $0x1f8] sm:$0xff]  ;;  %v1859_v22 = vpack.c.bf16 %v463_v16, %v461_v15  ;;  %v460_v23 = vld [vmem:[#allocation5 + $0x320] sm:$0xff] }
  0x8d   : > { %v1815_v13 = vpack.c.bf16 %v321_v6, %v319_v5  ;;  %v324_v26 = vld [vmem:[#allocation5 + $0x1f0] sm:$0xff]  ;;  %v465_v27 = vld [vmem:[#allocation5 + $0x348] sm:$0xff]  ;;  %v467_v28 = vld [vmem:[#allocation5 + $0x358] sm:$0xff] }
  0x8e   : > { %1846 = vmatpush1.bf16.msra.mxu1 %v1845_v47  ;;  %v1821_v30 = vpack.c.bf16 %v324_v26, %v322_v21  ;;  %v1863_v31 = vpack.c.bf16 %v467_v28, %v465_v27  ;;  %v464_v32 = vld [vmem:[#allocation5 + $0x340] sm:$0xff]  ;;  %v466_v33 = vld [vmem:[#allocation5 + $0x350] sm:$0xff]  ;;  %v469_v34 = vld [vmem:[#allocation5 + $0x368] sm:$0xff] }
  0x8f   : > { %1794 = vmatpush1.bf16.msra.mxu0 %v1793_v12  ;;  %1848 = vmatprep.subr.bf16.mxu1 %v1847_v50  ;;  %v458_v12 = vld [vmem:[#allocation5 + $0x310] sm:$0xff]  ;;  %v471_v35 = vld [vmem:[#allocation5 + $0x378] sm:$0xff]  ;;  %v258_v37 = vld [vmem:[%s2759_s25] sm:$0xff] }
  0x90   : > { %1796 = vmatprep.subr.bf16.mxu0 %v1795_v17  ;;  %v323_v17 = vld [vmem:[#allocation5 + $0x1e8] sm:$0xff]  ;;  %v1857_v19 = vpack.c.bf16 %v458_v12, %v456_v11  ;;  %v1867_v38 = vpack.c.bf16 %v471_v35, %v469_v34  ;;  %v468_v39 = vld [vmem:[#allocation5 + $0x360] sm:$0xff]  ;;  %v470_v40 = vld [vmem:[#allocation5 + $0x370] sm:$0xff] }
  0x91   : > { %v1819_v25 = vpack.c.bf16 %v325_v18, %v323_v17  ;;  %v473_v42 = vld [vmem:[#allocation5 + $0x388] sm:$0xff]  ;;  %v475_v43 = vld [vmem:[#allocation5 + $0x398] sm:$0xff]  ;;  %v1869_v44 = vpack.c.bf16 %v470_v40, %v468_v39  ;;  %v260_v45 = vld [vmem:[%s2759_s25 + $0x10] sm:$0xff] }
  0x92   : > { %1850 = vmatpush1.bf16.msra.mxu1 %v1849_v59  ;;  %v1871_v46 = vpack.c.bf16 %v475_v43, %v473_v42  ;;  %v472_v47 = vld [vmem:[#allocation5 + $0x380] sm:$0xff]  ;;  %v477_v49 = vld [vmem:[#allocation5 + $0x3a8] sm:$0xff]  ;;  %v479_v50 = vld [vmem:[#allocation5 + $0x3b8] sm:$0xff] }
  0x93   : > { %1798 = vmatpush1.bf16.msra.mxu0 %v1797_v24  ;;  %1852 = vmatprep.subr.bf16.mxu1 %v1851_v62  ;;  %v462_v24 = vld [vmem:[#allocation5 + $0x330] sm:$0xff]  ;;  %v1875_v52 = vpack.c.bf16 %v479_v50, %v477_v49  ;;  %v481_v56 = vld [vmem:[#allocation5 + $0x3c8] sm:$0xff]  ;;  %v483_v57 = vld [vmem:[#allocation5 + $0x3d8] sm:$0xff] }
  0x94   : > { %1800 = vmatprep.subr.bf16.mxu0 %v1799_v29  ;;  %v1861_v29 = vpack.c.bf16 %v462_v24, %v460_v23  ;;  %v478_v54 = vld [vmem:[#allocation5 + $0x3b0] sm:$0xff]  ;;  %v1879_v58 = vpack.c.bf16 %v483_v57, %v481_v56  ;;  %v480_v59 = vld [vmem:[#allocation5 + $0x3c0] sm:$0xff]  ;;  %v485_v62 = vld [vmem:[#allocation5 + $0x3e8] sm:$0xff] }
  0x95   : > { %v487_v63 = vld [vmem:[#allocation5 + $0x3f8] sm:$0xff]  ;;  %v486_v2 = vld [vmem:[#allocation5 + $0x3f0] sm:$0xff]  ;;  %v588_v4 = vld [vmem:[#allocation5 + $0x408] sm:$0xff] }
  0x96   : > { %1854 = vmatpush1.bf16.msra.mxu1 %v1853_v7  ;;  %v1883_v0 = vpack.c.bf16 %v487_v63, %v485_v62  ;;  %v590_v5 = vld [vmem:[#allocation5 + $0x418] sm:$0xff]  ;;  %v587_v6 = vld [vmem:[#allocation5 + $0x400] sm:$0xff]  ;;  %v592_v9 = vld [vmem:[#allocation5 + $0x428] sm:$0xff] }
  0x97   : > { %1802 = vmatpush1.bf16.msra.mxu0 %v1801_v36  ;;  %1856 = vmatprep.subr.bf16.mxu1 %v1855_v10  ;;  %v1865_v36 = vpack.c.bf16 %v466_v33, %v464_v32  ;;  %v1887_v7 = vpack.c.bf16 %v590_v5, %v588_v4  ;;  %v594_v10 = vld [vmem:[#allocation5 + $0x438] sm:$0xff]  ;;  %v593_v14 = vld [vmem:[#allocation5 + $0x430] sm:$0xff]  ;;  %v596_v15 = vld [vmem:[#allocation5 + $0x448] sm:$0xff] }
  0x98   : > { %1804 = vmatprep.subr.bf16.mxu0 %v1803_v41  ;;  %v261_v41 = vld [vmem:[%s2759_s25 + $0x18] sm:$0xff]  ;;  %v1891_v12 = vpack.c.bf16 %v594_v10, %v592_v9  ;;  %v600_v21 = vld [vmem:[#allocation5 + $0x468] sm:$0xff]  ;;  %v601_v26 = vld [vmem:[#allocation5 + $0x470] sm:$0xff] }
  0x99   : > { %v598_v16 = vld [vmem:[#allocation5 + $0x458] sm:$0xff]  ;;  %v604_v27 = vld [vmem:[#allocation5 + $0x488] sm:$0xff]  ;;  %v605_v32 = vld [vmem:[#allocation5 + $0x490] sm:$0xff] }
  0x9a   : > { %1858 = vmatpush1.bf16.msra.mxu1 %v1857_v19  ;;  %v1895_v18 = vpack.c.bf16 %v598_v16, %v596_v15  ;;  %v595_v19 = vld [vmem:[#allocation5 + $0x440] sm:$0xff]  ;;  %v606_v28 = vld [vmem:[#allocation5 + $0x498] sm:$0xff]  ;;  %v608_v33 = vld [vmem:[#allocation5 + $0x4a8] sm:$0xff] }
  0x9b   : > { %1806 = vmatpush1.bf16.msra.mxu0 %v1805_v48  ;;  %1860 = vmatprep.subr.bf16.mxu1 %v1859_v22  ;;  %v474_v48 = vld [vmem:[#allocation5 + $0x390] sm:$0xff]  ;;  %v602_v22 = vld [vmem:[#allocation5 + $0x478] sm:$0xff]  ;;  %v612_v39 = vld [vmem:[#allocation5 + $0x4c8] sm:$0xff] }
  0x9c   : > { %1808 = vmatprep.subr.bf16.mxu0 %v1807_v53  ;;  %v1873_v51 = vpack.c.bf16 %v474_v48, %v472_v47  ;;  %v476_v53 = vld [vmem:[#allocation5 + $0x3a0] sm:$0xff]  ;;  %v1899_v24 = vpack.c.bf16 %v602_v22, %v600_v21  ;;  %v610_v34 = vld [vmem:[#allocation5 + $0x4b8] sm:$0xff]  ;;  %v617_v50 = vld [vmem:[#allocation5 + $0x4f0] sm:$0xff] }
  0x9d   : > { %v1877_v55 = vpack.c.bf16 %v478_v54, %v476_v53  ;;  %v614_v40 = vld [vmem:[#allocation5 + $0x4d8] sm:$0xff]  ;;  %v611_v43 = vld [vmem:[#allocation5 + $0x4c0] sm:$0xff]  ;;  %v621_v56 = vld [vmem:[#allocation5 + $0x510] sm:$0xff] }
  0x9e   : > { %1862 = vmatpush1.bf16.msra.mxu1 %v1861_v29  ;;  %v1911_v42 = vpack.c.bf16 %v614_v40, %v612_v39  ;;  %v615_v49 = vld [vmem:[#allocation5 + $0x4e0] sm:$0xff]  ;;  %v624_v57 = vld [vmem:[#allocation5 + $0x528] sm:$0xff]  ;;  %v625_v62 = vld [vmem:[#allocation5 + $0x530] sm:$0xff] }
  0x9f   : > { %1810 = vmatpush1.bf16.msra.mxu0 %v1809_v60  ;;  %1864 = vmatprep.subr.bf16.mxu1 %v1863_v31  ;;  %v482_v60 = vld [vmem:[#allocation5 + $0x3d0] sm:$0xff]  ;;  %v603_v31 = vld [vmem:[#allocation5 + $0x480] sm:$0xff]  ;;  %v1917_v53 = vpack.c.bf16 %v617_v50, %v615_v49  ;;  %v628_v63 = vld [vmem:[#allocation5 + $0x548] sm:$0xff] }
  0xa0   : > { %1812 = vmatprep.subr.bf16.mxu0 %v1811_v1  ;;  %v1881_v61 = vpack.c.bf16 %v482_v60, %v480_v59  ;;  %v484_v1 = vld [vmem:[#allocation5 + $0x3e0] sm:$0xff]  ;;  %v1905_v35 = vpack.c.bf16 %v605_v32, %v603_v31  ;;  %v629_v4 = vld [vmem:[#allocation5 + $0x550] sm:$0xff]  ;;  %v632_v5 = vld [vmem:[#allocation5 + $0x568] sm:$0xff] }
  0xa1   : > { %v1885_v3 = vpack.c.bf16 %v486_v2, %v484_v1  ;;  %v631_v9 = vld [vmem:[#allocation5 + $0x560] sm:$0xff]  ;;  %v633_v10 = vld [vmem:[#allocation5 + $0x570] sm:$0xff] }
  0xa2   : > { %1866 = vmatpush1.bf16.msra.mxu1 %v1865_v36  ;;  %v1907_v36 = vpack.c.bf16 %v610_v34, %v608_v33  ;;  %v635_v15 = vld [vmem:[#allocation5 + $0x580] sm:$0xff]  ;;  %v637_v16 = vld [vmem:[#allocation5 + $0x590] sm:$0xff] }
  0xa3   : > { %1814 = vmatpush1.bf16.msra.mxu0 %v1813_v8  ;;  %1868 = vmatprep.subr.bf16.mxu1 %v1867_v38  ;;  %v589_v8 = vld [vmem:[#allocation5 + $0x410] sm:$0xff]  ;;  %v639_v21 = vld [vmem:[#allocation5 + $0x5a0] sm:$0xff] }
  0xa4   : > { %1816 = vmatprep.subr.bf16.mxu0 %v1815_v13  ;;  %v1889_v11 = vpack.c.bf16 %v589_v8, %v587_v6  ;;  %v591_v13 = vld [vmem:[#allocation5 + $0x420] sm:$0xff]  ;;  %v609_v38 = vld [vmem:[#allocation5 + $0x4b0] sm:$0xff]  ;;  %v634_v6 = vld [vmem:[#allocation5 + $0x578] sm:$0xff] }
  0xa5   : > { %v1893_v17 = vpack.c.bf16 %v593_v14, %v591_v13  ;;  %v1931_v8 = vpack.c.bf16 %v634_v6, %v632_v5  ;;  %v1933_v13 = vpack.c.bf16 %v633_v10, %v631_v9  ;;  %v641_v22 = vld [vmem:[#allocation5 + $0x5b0] sm:$0xff]  ;;  %v643_v50 = vld [vmem:[#allocation5 + $0x5c0] sm:$0xff]  ;;  %v759_v6 = vld [vmem:[#allocation5 + $0x648] sm:$0xff] }
  0xa6   : > { %1870 = vmatpush1.bf16.msra.mxu1 %v1869_v44  ;;  %v613_v44 = vld [vmem:[#allocation5 + $0x4d0] sm:$0xff]  ;;  %v758_v10 = vld [vmem:[#allocation5 + $0x640] sm:$0xff] }
  0xa7   : > { %1818 = vmatpush1.bf16.msra.mxu0 %v1817_v20  ;;  %1872 = vmatprep.subr.bf16.mxu1 %v1871_v46  ;;  %v597_v20 = vld [vmem:[#allocation5 + $0x450] sm:$0xff]  ;;  %v618_v46 = vld [vmem:[#allocation5 + $0x4f8] sm:$0xff]  ;;  %v1913_v47 = vpack.c.bf16 %v613_v44, %v611_v43 }
  0xa8   : > { %1820 = vmatprep.subr.bf16.mxu0 %v1819_v25  ;;  %v1897_v23 = vpack.c.bf16 %v597_v20, %v595_v19  ;;  %v599_v25 = vld [vmem:[#allocation5 + $0x460] sm:$0xff]  ;;  %v1937_v19 = vpack.c.bf16 %v637_v16, %v635_v15  ;;  %v756_v5 = vld [vmem:[#allocation5 + $0x630] sm:$0xff] }
  0xa9   : > { %v1901_v29 = vpack.c.bf16 %v601_v26, %v599_v25  ;;  %v762_v16 = vld [vmem:[#allocation5 + $0x660] sm:$0xff] }
  0xaa   : > { %1874 = vmatpush1.bf16.msra.mxu1 %v1873_v51  ;;  %v620_v51 = vld [vmem:[#allocation5 + $0x508] sm:$0xff] }
  0xab   : > { %1822 = vmatpush1.bf16.msra.mxu0 %v1821_v30  ;;  %1876 = vmatprep.subr.bf16.mxu1 %v1875_v52  ;;  %v1903_v30 = vpack.c.bf16 %v606_v28, %v604_v27  ;;  %v622_v52 = vld [vmem:[#allocation5 + $0x518] sm:$0xff]  ;;  %v326_v27 = vld [vmem:[#allocation7] ss:$8 sm:$0x3] }
  0xac   : > { %1888 = vmatprep.subr.bf16.mxu0 %v1887_v7  ;;  %v1919_v54 = vpack.c.bf16 %v622_v52, %v620_v51  ;;  %v645_v51 = vld [vmem:[#allocation5 + $0x5d0] sm:$0xff] }
  0xad   : > { %v1945_v52 = vpack.c.bf16 %v645_v51, %v643_v50  ;;  %v787_v50 = vld [vmem:[#allocation5 + $0x728] sm:$0xff]  ;;  %v789_v51 = vld [vmem:[#allocation5 + $0x738] sm:$0xff] }
  0xae   : > { %403 = vmatmul.mubr.f32.vlgmr.msra.gmra.mrb[0].mxu0 %v258_v37  ;;  %1878 = vmatpush1.bf16.msra.mxu1 %v1877_v55  ;;  %v607_v37 = vld [vmem:[#allocation5 + $0x4a0] sm:$0xff] }
  0xaf   : > { %408 = vmatprep.mubr.f32.mxu0 %v261_v41  ;;  %1880 = vmatprep.subr.bf16.mxu1 %v1879_v58  ;;  %v1909_v41 = vpack.c.bf16 %v609_v38, %v607_v37  ;;  %v619_v55 = vld [vmem:[#allocation5 + $0x500] sm:$0xff]  ;;  %v626_v58 = vld [vmem:[#allocation5 + $0x538] sm:$0xff] }
  0xb0   : > { %1890 = vmatpush1.bf16.msra.mxu0 %v1889_v11  ;;  %v1921_v59 = vpack.c.bf16 %v621_v56, %v619_v55  ;;  %v1923_v60 = vpack.c.bf16 %v626_v58, %v624_v57  ;;  %v636_v11 = vld [vmem:[#allocation5 + $0x588] sm:$0xff]  ;;  %v647_v56 = vld [vmem:[#allocation5 + $0x5e0] sm:$0xff]  ;;  %v649_v57 = vld [vmem:[#allocation5 + $0x5f0] sm:$0xff] }
  0xb1   : > { %1892 = vmatprep.subr.bf16.mxu0 %v1891_v12  ;;  %v638_v12 = vld [vmem:[#allocation5 + $0x598] sm:$0xff]  ;;  %v1949_v58 = vpack.c.bf16 %v649_v57, %v647_v56  ;;  %v791_v56 = vld [vmem:[#allocation5 + $0x748] sm:$0xff] }
  0xb2   : > { %409 = vmatmul.mubr.f32.gmra.mrb[2].mxu0 %v260_v45  ;;  %1882 = vmatpush1.bf16.msra.mxu1 %v1881_v61  ;;  %v616_v45 = vld [vmem:[#allocation5 + $0x4e8] sm:$0xff]  ;;  %v623_v61 = vld [vmem:[#allocation5 + $0x520] sm:$0xff]  ;;  %v1935_v14 = vpack.c.bf16 %v638_v12, %v636_v11  ;;  %v760_v11 = vld [vmem:[#allocation5 + $0x650] sm:$0xff] }
  0xb3   : > { %1884 = vmatprep.subr.bf16.mxu1 %v1883_v0  ;;  %v1915_v48 = vpack.c.bf16 %v618_v46, %v616_v45  ;;  %v630_v0 = vld [vmem:[#allocation5 + $0x558] sm:$0xff]  ;;  %v1925_v1 = vpack.c.bf16 %v625_v62, %v623_v61  ;;  %v750_v61 = vld [vmem:[#allocation5 + $0x600] sm:$0xff]  ;;  %v763_v12 = vld [vmem:[#allocation5 + $0x668] sm:$0xff] }
  0xb4   : > { %1894 = vmatpush1.bf16.msra.mxu0 %v1893_v17  ;;  %v1927_v2 = vpack.c.bf16 %v630_v0, %v628_v63  ;;  %v640_v17 = vld [vmem:[#allocation5 + $0x5a8] sm:$0xff]  ;;  %v752_v63 = vld [vmem:[#allocation5 + $0x610] sm:$0xff]  ;;  %v793_v57 = vld [vmem:[#allocation5 + $0x758] sm:$0xff] }
  0xb5   : > { %1896 = vmatprep.subr.bf16.mxu0 %v1895_v18  ;;  %v642_v18 = vld [vmem:[#allocation5 + $0x5b8] sm:$0xff]  ;;  %v755_v0 = vld [vmem:[#allocation5 + $0x628] sm:$0xff] }
  0xb6   : > { %1886 = vmatpush1.bf16.msra.mxu1 %v1885_v3  ;;  %v627_v3 = vld [vmem:[#allocation5 + $0x540] sm:$0xff]  ;;  %v1939_v20 = vpack.c.bf16 %v642_v18, %v640_v17  ;;  %v764_v17 = vld [vmem:[#allocation5 + $0x670] sm:$0xff]  ;;  %v767_v18 = vld [vmem:[#allocation5 + $0x688] sm:$0xff] }
  0xb7   : > { %v1929_v7 = vpack.c.bf16 %v629_v4, %v627_v3  ;;  %v754_v4 = vld [vmem:[#allocation5 + $0x620] sm:$0xff] }
  0xb8   : > { %1898 = vmatpush1.bf16.msra.mxu0 %v1897_v23  ;;  %v1941_v23 = vpack.c.bf16 %v641_v22, %v639_v21  ;;  %v766_v22 = vld [vmem:[#allocation5 + $0x680] sm:$0xff] }
  0xb9   : > { %1900 = vmatprep.subr.bf16.mxu0 %v1899_v24  ;;  %v328_v24 = vlaneseq }
  0xbb   : > { %v329_v25 = vshrl.u32 %v328_v24, 7  ;;  %v771_v24 = vld [vmem:[#allocation5 + $0x6a8] sm:$0xff] }
  0xbc   : > { %1902 = vmatpush1.bf16.msra.mxu0 %v1901_v29 }
  0xbd   : > { %1904 = vmatprep.subr.bf16.mxu0 %v1903_v30  ;;  %v2773_v26 = vsub.s32 0, %v329_v25  ;;  %v2775_v28 = vsub.s32 1, %v329_v25  ;;  %v773_v25 = vld [vmem:[#allocation5 + $0x6b8] sm:$0xff] }
  0xbf   : > { %v331_v29 = vrot.slane %v326_v27, %v2773_v26  ;;  %v335_v30 = vrot.slane %v326_v27, %v2775_v28 }
  0xc0   : > { %1906 = vmatpush1.bf16.msra.mxu0 %v1905_v35 }
  0xc1   : > { %1908 = vmatprep.subr.bf16.mxu0 %v1907_v36 }
  0xc4   : > { %1910 = vmatpush1.bf16.msra.mxu0 %v1909_v41 }
  0xc5   : > { %1912 = vmatprep.subr.bf16.mxu0 %v1911_v42 }
  0xc8   : > { %1914 = vmatpush1.bf16.msra.mxu0 %v1913_v47  ;;  %v644_v47 = vld [vmem:[#allocation5 + $0x5c8] sm:$0xff] }
  0xc9   : > { %1916 = vmatprep.subr.bf16.mxu0 %v1915_v48  ;;  %v646_v48 = vld [vmem:[#allocation5 + $0x5d8] sm:$0xff] }
  0xca   : > { %v1943_v49 = vpack.c.bf16 %v646_v48, %v644_v47  ;;  %v782_v48 = vld [vmem:[#allocation5 + $0x700] sm:$0xff] }
  0xcc   : > { %1918 = vmatpush1.bf16.msra.mxu0 %v1917_v53  ;;  %v648_v53 = vld [vmem:[#allocation5 + $0x5e8] sm:$0xff] }
  0xcd   : > { %1920 = vmatprep.subr.bf16.mxu0 %v1919_v54  ;;  %v650_v54 = vld [vmem:[#allocation5 + $0x5f8] sm:$0xff] }
  0xce   : > { %v1947_v55 = vpack.c.bf16 %v650_v54, %v648_v53  ;;  %v1987_v53 = vpack.c.bf16 %v789_v51, %v787_v50  ;;  %v786_v54 = vld [vmem:[#allocation5 + $0x720] sm:$0xff]  ;;  %v916_v50 = vld [vmem:[#allocation5 + $0x808] sm:$0xff]  ;;  %v918_v51 = vld [vmem:[#allocation5 + $0x818] sm:$0xff] }
  0xd0   : > { %1922 = vmatpush1.bf16.msra.mxu0 %v1921_v59  ;;  %v751_v59 = vld [vmem:[#allocation5 + $0x608] sm:$0xff] }
  0xd1   : > { %1924 = vmatprep.subr.bf16.mxu0 %v1923_v60  ;;  %v753_v60 = vld [vmem:[#allocation5 + $0x618] sm:$0xff] }
  0xd2   : > { %v1951_v62 = vpack.c.bf16 %v753_v60, %v751_v59  ;;  %v1991_v59 = vpack.c.bf16 %v793_v57, %v791_v56  ;;  %v790_v60 = vld [vmem:[#allocation5 + $0x740] sm:$0xff]  ;;  %v922_v56 = vld [vmem:[#allocation5 + $0x838] sm:$0xff] }
  0xd4   : > { %1926 = vmatpush1.bf16.msra.mxu0 %v1925_v1  ;;  %v757_v1 = vld [vmem:[#allocation5 + $0x638] sm:$0xff]  ;;  %1952 = vmatprep.subr.bf16.mxu1 %v1951_v62  ;;  %v795_v62 = vld [vmem:[#allocation5 + $0x768] sm:$0xff] }
  0xd5   : > { %1928 = vmatprep.subr.bf16.mxu0 %v1927_v2  ;;  %v1953_v2 = vpack.c.bf16 %v752_v63, %v750_v61  ;;  %v1955_v3 = vpack.c.bf16 %v757_v1, %v755_v0  ;;  %v792_v61 = vld [vmem:[#allocation5 + $0x750] sm:$0xff]  ;;  %v797_v63 = vld [vmem:[#allocation5 + $0x778] sm:$0xff] }
  0xd6   : > { %v1993_v0 = vpack.c.bf16 %v792_v61, %v790_v60  ;;  %v1995_v1 = vpack.c.bf16 %v797_v63, %v795_v62  ;;  %v921_v60 = vld [vmem:[#allocation5 + $0x830] sm:$0xff]  ;;  %v924_v61 = vld [vmem:[#allocation5 + $0x848] sm:$0xff]  ;;  %v926_v62 = vld [vmem:[#allocation5 + $0x858] sm:$0xff] }
  0xd8   : > { %1930 = vmatpush1.bf16.msra.mxu0 %v1929_v7  ;;  %v761_v7 = vld [vmem:[#allocation5 + $0x658] sm:$0xff] }
  0xd9   : > { %1932 = vmatprep.subr.bf16.mxu0 %v1931_v8  ;;  %v1957_v8 = vpack.c.bf16 %v756_v5, %v754_v4  ;;  %v1959_v9 = vpack.c.bf16 %v761_v7, %v759_v6  ;;  %v799_v4 = vld [vmem:[#allocation5 + $0x788] sm:$0xff]  ;;  %v801_v5 = vld [vmem:[#allocation5 + $0x798] sm:$0xff] }
  0xda   : > { %v1999_v7 = vpack.c.bf16 %v801_v5, %v799_v4  ;;  %v930_v4 = vld [vmem:[#allocation5 + $0x878] sm:$0xff] }
  0xdc   : > { %1934 = vmatpush1.bf16.msra.mxu0 %v1933_v13  ;;  %v765_v13 = vld [vmem:[#allocation5 + $0x678] sm:$0xff] }
  0xdd   : > { %1936 = vmatprep.subr.bf16.mxu0 %v1935_v14  ;;  %v1961_v14 = vpack.c.bf16 %v760_v11, %v758_v10  ;;  %v1963_v15 = vpack.c.bf16 %v765_v13, %v763_v12  ;;  %v803_v10 = vld [vmem:[#allocation5 + $0x7a8] sm:$0xff]  ;;  %v805_v11 = vld [vmem:[#allocation5 + $0x7b8] sm:$0xff] }
  0xde   : > { %v2003_v13 = vpack.c.bf16 %v805_v11, %v803_v10  ;;  %v934_v10 = vld [vmem:[#allocation5 + $0x898] sm:$0xff] }
  0xe0   : > { %1938 = vmatpush1.bf16.msra.mxu0 %v1937_v19  ;;  %v769_v19 = vld [vmem:[#allocation5 + $0x698] sm:$0xff] }
  0xe1   : > { %1940 = vmatprep.subr.bf16.mxu0 %v1939_v20  ;;  %v1965_v20 = vpack.c.bf16 %v764_v17, %v762_v16  ;;  %v1967_v21 = vpack.c.bf16 %v769_v19, %v767_v18  ;;  %v489_v17 = vld [vmem:[#allocation7 + $0x1] ss:$8 sm:$0x3] }
  0xe2   : > { %v494_v18 = vrot.slane %v489_v17, %v2773_v26  ;;  %v498_v19 = vrot.slane %v489_v17, %v2775_v28 }
  0xe4   : > { %1942 = vmatpush1.bf16.msra.mxu0 %v1941_v23  ;;  %v768_v23 = vld [vmem:[#allocation5 + $0x690] sm:$0xff] }
  0xe5   : > { %1944 = vmatprep.subr.bf16.mxu0 %v1943_v49  ;;  %v1969_v27 = vpack.c.bf16 %v768_v23, %v766_v22  ;;  %v784_v49 = vld [vmem:[#allocation5 + $0x710] sm:$0xff] }
  0xe8   : > { %1946 = vmatpush1.bf16.msra.mxu0 %v1945_v52  ;;  %v1985_v52 = vpack.c.bf16 %v784_v49, %v782_v48  ;;  %v812_v48 = vld [vmem:[#allocation5 + $0x7f0] sm:$0xff] }
  0xe9   : > { %1948 = vmatprep.subr.bf16.mxu0 %v1947_v55  ;;  %v788_v55 = vld [vmem:[#allocation5 + $0x730] sm:$0xff] }
  0xec   : > { %1950 = vmatpush1.bf16.msra.mxu0 %v1949_v58  ;;  %v1989_v58 = vpack.c.bf16 %v788_v55, %v786_v54  ;;  %v917_v54 = vld [vmem:[#allocation5 + $0x810] sm:$0xff]  ;;  %v920_v55 = vld [vmem:[#allocation5 + $0x828] sm:$0xff] }
 0x181   : > { %v404_v31 = vpop.f32.mrb[0].mxu0 }
 0x182   : > { %v405_v32 = vadd.f32 %v404_v31, %v331_v29  ;;  %v406_v33 = vpop.f32.mrb[1].mxu0  ;;  %v772_v31 = vld [vmem:[#allocation5 + $0x6b0] sm:$0xff] }
 0x183   : > { %v407_v34 = vadd.f32 %v406_v33, %v335_v30  ;;  %v777_v33 = vld [vmem:[#allocation5 + $0x6d8] sm:$0xff] }
 0x184   : > { %v415_v35 = vmul.f32 0.01, %v405_v32 }
 0x185   : > { %v410_v36 = vpop.f32.mrb[2].mxu0  ;;  %v416_v37 = vmul.f32 0.01, %v407_v34 }
 0x186   : > { %v411_v38 = vadd.f32 %v410_v36, %v331_v29  ;;  %v412_v39 = vpop.f32.mrb[3].mxu0  ;;  %v419_v42 = vmax.f32 %v405_v32, %v415_v35  ;;  %v1971_v29 = vpack.c.bf16 %v773_v25, %v771_v24  ;;  %v775_v32 = vld [vmem:[#allocation5 + $0x6c8] sm:$0xff]  ;;  %v774_v36 = vld [vmem:[#allocation5 + $0x6c0] sm:$0xff] }
 0x187   : > { %v413_v40 = vadd.f32 %v412_v39, %v335_v30  ;;  %v420_v41 = vmax.f32 %v407_v34, %v416_v37  ;;  %v770_v30 = vld [vmem:[#allocation5 + $0x6a0] sm:$0xff]  ;;  %v1975_v35 = vpack.c.bf16 %v777_v33, %v775_v32  ;;  %v776_v37 = vld [vmem:[#allocation5 + $0x6d0] sm:$0xff]  ;;  %v781_v39 = vld [vmem:[#allocation5 + $0x6f8] sm:$0xff] }
 0x188   : > { %v417_v43 = vmul.f32 0.01, %v411_v38  ;;  %v1973_v34 = vpack.c.bf16 %v772_v31, %v770_v30 }
 0x189   : > { %v418_v44 = vmul.f32 0.01, %v413_v40  ;;  %565 = vmatprep.mubr.f32.mxu1 %v420_v41 }
 0x18a   : > { %566 = vmatmul.mubr.f32.vlgmr.msra.gmra.mrb[0].mxu1 %v419_v42  ;;  %v421_v46 = vmax.f32 %v411_v38, %v417_v43  ;;  %v779_v38 = vld [vmem:[#allocation5 + $0x6e8] sm:$0xff]  ;;  %v778_v42 = vld [vmem:[#allocation5 + $0x6e0] sm:$0xff]  ;;  %v780_v43 = vld [vmem:[#allocation5 + $0x6f0] sm:$0xff] }
 0x18b   : > { %v422_v45 = vmax.f32 %v413_v40, %v418_v44  ;;  %1954 = vmatpush1.bf16.msra.mxu1 %v1953_v2  ;;  %v1977_v40 = vpack.c.bf16 %v776_v37, %v774_v36  ;;  %v1979_v41 = vpack.c.bf16 %v781_v39, %v779_v38  ;;  %v783_v44 = vld [vmem:[#allocation5 + $0x708] sm:$0xff]  ;;  %v794_v2 = vld [vmem:[#allocation5 + $0x760] sm:$0xff]  ;;  %v809_v39 = vld [vmem:[#allocation5 + $0x7d8] sm:$0xff] }
 0x18c   : > { %1956 = vmatprep.subr.bf16.mxu1 %v1955_v3  ;;  %v796_v3 = vld [vmem:[#allocation5 + $0x770] sm:$0xff]  ;;  %v807_v38 = vld [vmem:[#allocation5 + $0x7c8] sm:$0xff] }
 0x18d   : > { %571 = vmatprep.mubr.f32.mxu1 %v422_v45  ;;  %v785_v45 = vld [vmem:[#allocation5 + $0x718] sm:$0xff]  ;;  %v1997_v6 = vpack.c.bf16 %v796_v3, %v794_v2  ;;  %v925_v2 = vld [vmem:[#allocation5 + $0x850] sm:$0xff]  ;;  %v928_v3 = vld [vmem:[#allocation5 + $0x868] sm:$0xff] }
 0x18e   : > { %572 = vmatmul.mubr.f32.gmra.mrb[2].mxu1 %v421_v46  ;;  %v1981_v46 = vpack.c.bf16 %v780_v43, %v778_v42  ;;  %v1983_v47 = vpack.c.bf16 %v785_v45, %v783_v44  ;;  %v808_v42 = vld [vmem:[#allocation5 + $0x7d0] sm:$0xff]  ;;  %v811_v44 = vld [vmem:[#allocation5 + $0x7e8] sm:$0xff]  ;;  %v813_v45 = vld [vmem:[#allocation5 + $0x7f8] sm:$0xff] }
 0x18f   : > { %1958 = vmatpush1.bf16.msra.mxu1 %v1957_v8  ;;  %v798_v8 = vld [vmem:[#allocation5 + $0x780] sm:$0xff] }
 0x190   : > { %1960 = vmatprep.subr.bf16.mxu1 %v1959_v9  ;;  %v800_v9 = vld [vmem:[#allocation5 + $0x790] sm:$0xff] }
 0x191   : > { %v2001_v12 = vpack.c.bf16 %v800_v9, %v798_v8  ;;  %v929_v8 = vld [vmem:[#allocation5 + $0x870] sm:$0xff]  ;;  %v932_v9 = vld [vmem:[#allocation5 + $0x888] sm:$0xff] }
 0x193   : > { %1962 = vmatpush1.bf16.msra.mxu1 %v1961_v14  ;;  %v802_v14 = vld [vmem:[#allocation5 + $0x7a0] sm:$0xff] }
 0x194   : > { %1964 = vmatprep.subr.bf16.mxu1 %v1963_v15  ;;  %v804_v15 = vld [vmem:[#allocation5 + $0x7b0] sm:$0xff] }
 0x195   : > { %v2005_v16 = vpack.c.bf16 %v804_v15, %v802_v14  ;;  %v933_v14 = vld [vmem:[#allocation5 + $0x890] sm:$0xff]  ;;  %v936_v15 = vld [vmem:[#allocation5 + $0x8a8] sm:$0xff] }
 0x197   : > { %1966 = vmatpush1.bf16.msra.mxu1 %v1965_v20 }
 0x198   : > { %1968 = vmatprep.subr.bf16.mxu1 %v1967_v21 }
 0x19b   : > { %1970 = vmatpush1.bf16.msra.mxu1 %v1969_v27 }
 0x19c   : > { %1972 = vmatprep.subr.bf16.mxu1 %v1971_v29 }
 0x19f   : > { %1974 = vmatpush1.bf16.msra.mxu1 %v1973_v34 }
 0x1a0   : > { %1976 = vmatprep.subr.bf16.mxu1 %v1975_v35 }
 0x1a3   : > { %1978 = vmatpush1.bf16.msra.mxu1 %v1977_v40  ;;  %v2007_v40 = vpack.c.bf16 %v809_v39, %v807_v38  ;;  %v947_v39 = vld [vmem:[#allocation5 + $0x900] sm:$0xff] }
 0x1a4   : > { %1980 = vmatprep.subr.bf16.mxu1 %v1979_v41  ;;  %v806_v41 = vld [vmem:[#allocation5 + $0x7c0] sm:$0xff] }
 0x1a5   : > { %v2009_v43 = vpack.c.bf16 %v808_v42, %v806_v41  ;;  %v952_v41 = vld [vmem:[#allocation5 + $0x928] sm:$0xff]  ;;  %v954_v42 = vld [vmem:[#allocation5 + $0x938] sm:$0xff] }
 0x1a7   : > { %1982 = vmatpush1.bf16.msra.mxu1 %v1981_v46  ;;  %v2011_v46 = vpack.c.bf16 %v813_v45, %v811_v44  ;;  %v2051_v44 = vpack.c.bf16 %v954_v42, %v952_v41  ;;  %v951_v45 = vld [vmem:[#allocation5 + $0x920] sm:$0xff]  ;;  %v1079_v41 = vld [vmem:[#allocation5 + $0xa08] sm:$0xff]  ;;  %v1081_v42 = vld [vmem:[#allocation5 + $0xa18] sm:$0xff] }
 0x1a8   : > { %1984 = vmatprep.subr.bf16.mxu1 %v1983_v47  ;;  %v810_v47 = vld [vmem:[#allocation5 + $0x7e0] sm:$0xff] }
 0x1a9   : > { %v2013_v49 = vpack.c.bf16 %v812_v48, %v810_v47  ;;  %v956_v47 = vld [vmem:[#allocation5 + $0x948] sm:$0xff]  ;;  %v958_v48 = vld [vmem:[#allocation5 + $0x958] sm:$0xff] }
 0x1ab   : > { %1986 = vmatpush1.bf16.msra.mxu1 %v1985_v52  ;;  %v915_v52 = vld [vmem:[#allocation5 + $0x800] sm:$0xff] }
 0x1ac   : > { %1988 = vmatprep.subr.bf16.mxu1 %v1987_v53  ;;  %v2015_v53 = vpack.c.bf16 %v918_v51, %v916_v50  ;;  %v2017_v57 = vpack.c.bf16 %v917_v54, %v915_v52  ;;  %v2055_v50 = vpack.c.bf16 %v958_v48, %v956_v47  ;;  %v955_v51 = vld [vmem:[#allocation5 + $0x940] sm:$0xff]  ;;  %v957_v52 = vld [vmem:[#allocation5 + $0x950] sm:$0xff]  ;;  %v962_v54 = vld [vmem:[#allocation5 + $0x978] sm:$0xff] }
 0x1ad   : > { %v1085_v47 = vld [vmem:[#allocation5 + $0xa38] sm:$0xff] }
 0x1ae   : > { %2016 = vmatprep.subr.bf16.mxu0 %v2015_v53  ;;  %v960_v53 = vld [vmem:[#allocation5 + $0x968] sm:$0xff] }
 0x1af   : > { %1990 = vmatpush1.bf16.msra.mxu1 %v1989_v58  ;;  %v2019_v58 = vpack.c.bf16 %v922_v56, %v920_v55  ;;  %v2057_v55 = vpack.c.bf16 %v957_v52, %v955_v51  ;;  %v2059_v56 = vpack.c.bf16 %v962_v54, %v960_v53  ;;  %v1084_v51 = vld [vmem:[#allocation5 + $0xa30] sm:$0xff]  ;;  %v1087_v52 = vld [vmem:[#allocation5 + $0xa48] sm:$0xff]  ;;  %v1089_v53 = vld [vmem:[#allocation5 + $0xa58] sm:$0xff] }
 0x1b0   : > { %1992 = vmatprep.subr.bf16.mxu1 %v1991_v59  ;;  %v919_v59 = vld [vmem:[#allocation5 + $0x820] sm:$0xff] }
 0x1b1   : > { %v2021_v63 = vpack.c.bf16 %v921_v60, %v919_v59  ;;  %v964_v59 = vld [vmem:[#allocation5 + $0x988] sm:$0xff]  ;;  %v966_v60 = vld [vmem:[#allocation5 + $0x998] sm:$0xff] }
 0x1b3   : > { %1994 = vmatpush1.bf16.msra.mxu1 %v1993_v0  ;;  %v2023_v0 = vpack.c.bf16 %v926_v62, %v924_v61  ;;  %v2063_v62 = vpack.c.bf16 %v966_v60, %v964_v59  ;;  %v1093_v59 = vld [vmem:[#allocation5 + $0xa78] sm:$0xff] }
 0x1b4   : > { %1996 = vmatprep.subr.bf16.mxu1 %v1995_v1  ;;  %v923_v1 = vld [vmem:[#allocation5 + $0x840] sm:$0xff] }
 0x1b5   : > { %v2025_v5 = vpack.c.bf16 %v925_v2, %v923_v1  ;;  %v968_v1 = vld [vmem:[#allocation5 + $0x9a8] sm:$0xff]  ;;  %v970_v2 = vld [vmem:[#allocation5 + $0x9b8] sm:$0xff] }
 0x1b7   : > { %1998 = vmatpush1.bf16.msra.mxu1 %v1997_v6  ;;  %v2027_v6 = vpack.c.bf16 %v930_v4, %v928_v3  ;;  %v2067_v4 = vpack.c.bf16 %v970_v2, %v968_v1  ;;  %v1097_v1 = vld [vmem:[#allocation5 + $0xa98] sm:$0xff] }
 0x1b8   : > { %2000 = vmatprep.subr.bf16.mxu1 %v1999_v7  ;;  %v927_v7 = vld [vmem:[#allocation5 + $0x860] sm:$0xff] }
 0x1b9   : > { %v2029_v11 = vpack.c.bf16 %v929_v8, %v927_v7  ;;  %v652_v8 = vld [vmem:[#allocation7 + $0x2] ss:$8 sm:$0x3] }
 0x1bb   : > { %2002 = vmatpush1.bf16.msra.mxu1 %v2001_v12  ;;  %v2031_v12 = vpack.c.bf16 %v934_v10, %v932_v9  ;;  %v657_v9 = vrot.slane %v652_v8, %v2773_v26  ;;  %v661_v10 = vrot.slane %v652_v8, %v2775_v28 }
 0x1bc   : > { %2004 = vmatprep.subr.bf16.mxu1 %v2003_v13  ;;  %v931_v13 = vld [vmem:[#allocation5 + $0x880] sm:$0xff] }
 0x1bd   : > { %v2033_v17 = vpack.c.bf16 %v933_v14, %v931_v13 }
 0x1bf   : > { %2006 = vmatpush1.bf16.msra.mxu1 %v2005_v16  ;;  %v938_v16 = vld [vmem:[#allocation5 + $0x8b8] sm:$0xff] }
 0x1c0   : > { %2008 = vmatprep.subr.bf16.mxu1 %v2007_v40  ;;  %v949_v40 = vld [vmem:[#allocation5 + $0x910] sm:$0xff] }
 0x1c3   : > { %2010 = vmatpush1.bf16.msra.mxu1 %v2009_v43  ;;  %v2049_v43 = vpack.c.bf16 %v949_v40, %v947_v39  ;;  %v977_v39 = vld [vmem:[#allocation5 + $0x9f0] sm:$0xff] }
 0x1c4   : > { %2012 = vmatprep.subr.bf16.mxu1 %v2011_v46  ;;  %v953_v46 = vld [vmem:[#allocation5 + $0x930] sm:$0xff] }
 0x1c7   : > { %2014 = vmatpush1.bf16.msra.mxu1 %v2013_v49  ;;  %v2053_v49 = vpack.c.bf16 %v953_v46, %v951_v45  ;;  %v1080_v45 = vld [vmem:[#allocation5 + $0xa10] sm:$0xff]  ;;  %v1083_v46 = vld [vmem:[#allocation5 + $0xa28] sm:$0xff] }
 0x25d   : > { %v567_v20 = vpop.f32.mrb[0].mxu1 }
 0x25e   : > { %v568_v21 = vadd.f32 %v567_v20, %v494_v18  ;;  %v569_v22 = vpop.f32.mrb[1].mxu1  ;;  %v937_v20 = vld [vmem:[#allocation5 + $0x8b0] sm:$0xff] }
 0x25f   : > { %v570_v23 = vadd.f32 %v569_v22, %v498_v19  ;;  %v942_v22 = vld [vmem:[#allocation5 + $0x8d8] sm:$0xff] }
 0x260   : > { %v578_v24 = vmul.f32 0.01, %v568_v21 }
 0x261   : > { %v579_v25 = vmul.f32 0.01, %v570_v23  ;;  %v573_v27 = vpop.f32.mrb[2].mxu1 }
 0x262   : > { %v574_v29 = vadd.f32 %v573_v27, %v494_v18  ;;  %v575_v30 = vpop.f32.mrb[3].mxu1  ;;  %v582_v33 = vmax.f32 %v568_v21, %v578_v24  ;;  %v2035_v18 = vpack.c.bf16 %v938_v16, %v936_v15  ;;  %v940_v21 = vld [vmem:[#allocation5 + $0x8c8] sm:$0xff]  ;;  %v941_v27 = vld [vmem:[#allocation5 + $0x8d0] sm:$0xff] }
 0x263   : > { %v583_v31 = vmax.f32 %v570_v23, %v579_v25  ;;  %v576_v32 = vadd.f32 %v575_v30, %v498_v19  ;;  %v935_v19 = vld [vmem:[#allocation5 + $0x8a0] sm:$0xff]  ;;  %v2039_v24 = vpack.c.bf16 %v942_v22, %v940_v21  ;;  %v946_v30 = vld [vmem:[#allocation5 + $0x8f8] sm:$0xff] }
 0x264   : > { %v580_v34 = vmul.f32 0.01, %v574_v29  ;;  %v2037_v23 = vpack.c.bf16 %v937_v20, %v935_v19  ;;  %v939_v25 = vld [vmem:[#allocation5 + $0x8c0] sm:$0xff] }
 0x265   : > { %v581_v35 = vmul.f32 0.01, %v576_v32  ;;  %728 = vmatprep.mubr.f32.mxu0 %v583_v31  ;;  %v2041_v31 = vpack.c.bf16 %v941_v27, %v939_v25 }
 0x266   : > { %729 = vmatmul.mubr.f32.vlgmr.msra.gmra.mrb[4].mxu0 %v582_v33  ;;  %v584_v37 = vmax.f32 %v574_v29, %v580_v34  ;;  %v944_v29 = vld [vmem:[#allocation5 + $0x8e8] sm:$0xff]  ;;  %v943_v33 = vld [vmem:[#allocation5 + $0x8e0] sm:$0xff]  ;;  %v945_v34 = vld [vmem:[#allocation5 + $0x8f0] sm:$0xff] }
 0x267   : > { %v585_v36 = vmax.f32 %v576_v32, %v581_v35  ;;  %2018 = vmatpush1.bf16.msra.mxu0 %v2017_v57  ;;  %v2043_v32 = vpack.c.bf16 %v946_v30, %v944_v29  ;;  %v948_v35 = vld [vmem:[#allocation5 + $0x908] sm:$0xff]  ;;  %v959_v57 = vld [vmem:[#allocation5 + $0x960] sm:$0xff]  ;;  %v974_v30 = vld [vmem:[#allocation5 + $0x9d8] sm:$0xff] }
 0x268   : > { %2020 = vmatprep.subr.bf16.mxu0 %v2019_v58  ;;  %v961_v58 = vld [vmem:[#allocation5 + $0x970] sm:$0xff]  ;;  %v972_v29 = vld [vmem:[#allocation5 + $0x9c8] sm:$0xff] }
 0x269   : > { %734 = vmatprep.mubr.f32.mxu0 %v585_v36  ;;  %v950_v36 = vld [vmem:[#allocation5 + $0x918] sm:$0xff]  ;;  %v2061_v61 = vpack.c.bf16 %v961_v58, %v959_v57  ;;  %v1088_v57 = vld [vmem:[#allocation5 + $0xa50] sm:$0xff]  ;;  %v1091_v58 = vld [vmem:[#allocation5 + $0xa68] sm:$0xff] }
 0x26a   : > { %735 = vmatmul.mubr.f32.gmra.mrb[6].mxu0 %v584_v37  ;;  %v2045_v37 = vpack.c.bf16 %v945_v34, %v943_v33  ;;  %v2047_v38 = vpack.c.bf16 %v950_v36, %v948_v35  ;;  %v973_v33 = vld [vmem:[#allocation5 + $0x9d0] sm:$0xff]  ;;  %v976_v35 = vld [vmem:[#allocation5 + $0x9e8] sm:$0xff]  ;;  %v978_v36 = vld [vmem:[#allocation5 + $0x9f8] sm:$0xff] }
 0x26b   : > { %2022 = vmatpush1.bf16.msra.mxu0 %v2021_v63  ;;  %v963_v63 = vld [vmem:[#allocation5 + $0x980] sm:$0xff] }
 0x26c   : > { %2024 = vmatprep.subr.bf16.mxu0 %v2023_v0  ;;  %v965_v0 = vld [vmem:[#allocation5 + $0x990] sm:$0xff] }
 0x26d   : > { %v2065_v3 = vpack.c.bf16 %v965_v0, %v963_v63  ;;  %v1092_v63 = vld [vmem:[#allocation5 + $0xa70] sm:$0xff]  ;;  %v1095_v0 = vld [vmem:[#allocation5 + $0xa88] sm:$0xff] }
 0x26f   : > { %2026 = vmatpush1.bf16.msra.mxu0 %v2025_v5  ;;  %v967_v5 = vld [vmem:[#allocation5 + $0x9a0] sm:$0xff] }
 0x270   : > { %2028 = vmatprep.subr.bf16.mxu0 %v2027_v6  ;;  %v969_v6 = vld [vmem:[#allocation5 + $0x9b0] sm:$0xff] }
 0x271   : > { %v2069_v7 = vpack.c.bf16 %v969_v6, %v967_v5  ;;  %v1096_v5 = vld [vmem:[#allocation5 + $0xa90] sm:$0xff]  ;;  %v1099_v6 = vld [vmem:[#allocation5 + $0xaa8] sm:$0xff] }
 0x273   : > { %2030 = vmatpush1.bf16.msra.mxu0 %v2029_v11 }
 0x274   : > { %2032 = vmatprep.subr.bf16.mxu0 %v2031_v12 }
 0x277   : > { %2034 = vmatpush1.bf16.msra.mxu0 %v2033_v17 }
 0x278   : > { %2036 = vmatprep.subr.bf16.mxu0 %v2035_v18 }
 0x27b   : > { %2038 = vmatpush1.bf16.msra.mxu0 %v2037_v23 }
 0x27c   : > { %2040 = vmatprep.subr.bf16.mxu0 %v2039_v24 }
 0x27f   : > { %2042 = vmatpush1.bf16.msra.mxu0 %v2041_v31  ;;  %v2071_v31 = vpack.c.bf16 %v974_v30, %v972_v29  ;;  %v1110_v30 = vld [vmem:[#allocation5 + $0xb00] sm:$0xff] }
 0x280   : > { %2044 = vmatprep.subr.bf16.mxu0 %v2043_v32  ;;  %v971_v32 = vld [vmem:[#allocation5 + $0x9c0] sm:$0xff] }
 0x281   : > { %v2073_v34 = vpack.c.bf16 %v973_v33, %v971_v32  ;;  %v1115_v32 = vld [vmem:[#allocation5 + $0xb28] sm:$0xff]  ;;  %v1117_v33 = vld [vmem:[#allocation5 + $0xb38] sm:$0xff] }
 0x283   : > { %2046 = vmatpush1.bf16.msra.mxu0 %v2045_v37  ;;  %v2075_v37 = vpack.c.bf16 %v978_v36, %v976_v35  ;;  %v2115_v35 = vpack.c.bf16 %v1117_v33, %v1115_v32  ;;  %v1114_v36 = vld [vmem:[#allocation5 + $0xb20] sm:$0xff]  ;;  %v1242_v32 = vld [vmem:[#allocation5 + $0xc08] sm:$0xff]  ;;  %v1244_v33 = vld [vmem:[#allocation5 + $0xc18] sm:$0xff] }
 0x284   : > { %2048 = vmatprep.subr.bf16.mxu0 %v2047_v38  ;;  %v975_v38 = vld [vmem:[#allocation5 + $0x9e0] sm:$0xff] }
 0x285   : > { %v2077_v40 = vpack.c.bf16 %v977_v39, %v975_v38  ;;  %v1119_v38 = vld [vmem:[#allocation5 + $0xb48] sm:$0xff]  ;;  %v1121_v39 = vld [vmem:[#allocation5 + $0xb58] sm:$0xff] }
 0x287   : > { %2050 = vmatpush1.bf16.msra.mxu0 %v2049_v43  ;;  %v1078_v43 = vld [vmem:[#allocation5 + $0xa00] sm:$0xff] }
 0x288   : > { %2052 = vmatprep.subr.bf16.mxu0 %v2051_v44  ;;  %v2079_v44 = vpack.c.bf16 %v1081_v42, %v1079_v41  ;;  %v2081_v48 = vpack.c.bf16 %v1080_v45, %v1078_v43  ;;  %v2119_v41 = vpack.c.bf16 %v1121_v39, %v1119_v38  ;;  %v1118_v42 = vld [vmem:[#allocation5 + $0xb40] sm:$0xff]  ;;  %v1120_v43 = vld [vmem:[#allocation5 + $0xb50] sm:$0xff]  ;;  %v1125_v45 = vld [vmem:[#allocation5 + $0xb78] sm:$0xff] }
 0x289   : > { %v1248_v38 = vld [vmem:[#allocation5 + $0xc38] sm:$0xff] }
 0x28a   : > { %2080 = vmatprep.subr.bf16.mxu1 %v2079_v44  ;;  %v1123_v44 = vld [vmem:[#allocation5 + $0xb68] sm:$0xff] }
 0x28b   : > { %2054 = vmatpush1.bf16.msra.mxu0 %v2053_v49  ;;  %v2083_v49 = vpack.c.bf16 %v1085_v47, %v1083_v46  ;;  %v2121_v46 = vpack.c.bf16 %v1120_v43, %v1118_v42  ;;  %v2123_v47 = vpack.c.bf16 %v1125_v45, %v1123_v44  ;;  %v1247_v42 = vld [vmem:[#allocation5 + $0xc30] sm:$0xff]  ;;  %v1250_v43 = vld [vmem:[#allocation5 + $0xc48] sm:$0xff]  ;;  %v1252_v44 = vld [vmem:[#allocation5 + $0xc58] sm:$0xff] }
 0x28c   : > { %2056 = vmatprep.subr.bf16.mxu0 %v2055_v50  ;;  %v1082_v50 = vld [vmem:[#allocation5 + $0xa20] sm:$0xff] }
 0x28d   : > { %v2085_v54 = vpack.c.bf16 %v1084_v51, %v1082_v50  ;;  %v1127_v50 = vld [vmem:[#allocation5 + $0xb88] sm:$0xff]  ;;  %v1129_v51 = vld [vmem:[#allocation5 + $0xb98] sm:$0xff] }
 0x28f   : > { %2058 = vmatpush1.bf16.msra.mxu0 %v2057_v55  ;;  %v2087_v55 = vpack.c.bf16 %v1089_v53, %v1087_v52  ;;  %v2127_v53 = vpack.c.bf16 %v1129_v51, %v1127_v50  ;;  %v1256_v50 = vld [vmem:[#allocation5 + $0xc78] sm:$0xff] }
 0x290   : > { %2060 = vmatprep.subr.bf16.mxu0 %v2059_v56  ;;  %v1086_v56 = vld [vmem:[#allocation5 + $0xa40] sm:$0xff] }
 0x291   : > { %v2089_v60 = vpack.c.bf16 %v1088_v57, %v1086_v56  ;;  %v1131_v56 = vld [vmem:[#allocation5 + $0xba8] sm:$0xff]  ;;  %v1133_v57 = vld [vmem:[#allocation5 + $0xbb8] sm:$0xff] }
 0x293   : > { %2062 = vmatpush1.bf16.msra.mxu0 %v2061_v61  ;;  %v2091_v61 = vpack.c.bf16 %v1093_v59, %v1091_v58  ;;  %v2131_v59 = vpack.c.bf16 %v1133_v57, %v1131_v56  ;;  %v1260_v56 = vld [vmem:[#allocation5 + $0xc98] sm:$0xff] }
 0x294   : > { %2064 = vmatprep.subr.bf16.mxu0 %v2063_v62  ;;  %v1090_v62 = vld [vmem:[#allocation5 + $0xa60] sm:$0xff] }
 0x295   : > { %v2093_v2 = vpack.c.bf16 %v1092_v63, %v1090_v62  ;;  %v815_v63 = vld [vmem:[#allocation7 + $0x3] ss:$8 sm:$0x3] }
 0x297   : > { %2066 = vmatpush1.bf16.msra.mxu0 %v2065_v3  ;;  %v2095_v3 = vpack.c.bf16 %v1097_v1, %v1095_v0  ;;  %v820_v0 = vrot.slane %v815_v63, %v2773_v26  ;;  %v824_v1 = vrot.slane %v815_v63, %v2775_v28 }
 0x298   : > { %2068 = vmatprep.subr.bf16.mxu0 %v2067_v4  ;;  %v1094_v4 = vld [vmem:[#allocation5 + $0xa80] sm:$0xff] }
 0x299   : > { %v2097_v8 = vpack.c.bf16 %v1096_v5, %v1094_v4 }
 0x29b   : > { %2070 = vmatpush1.bf16.msra.mxu0 %v2069_v7  ;;  %v1101_v7 = vld [vmem:[#allocation5 + $0xab8] sm:$0xff] }
 0x29c   : > { %2072 = vmatprep.subr.bf16.mxu0 %v2071_v31  ;;  %v1112_v31 = vld [vmem:[#allocation5 + $0xb10] sm:$0xff] }
 0x29f   : > { %2074 = vmatpush1.bf16.msra.mxu0 %v2073_v34  ;;  %v2113_v34 = vpack.c.bf16 %v1112_v31, %v1110_v30  ;;  %v1140_v30 = vld [vmem:[#allocation5 + $0xbf0] sm:$0xff] }
 0x2a0   : > { %2076 = vmatprep.subr.bf16.mxu0 %v2075_v37  ;;  %v1116_v37 = vld [vmem:[#allocation5 + $0xb30] sm:$0xff] }
 0x2a3   : > { %2078 = vmatpush1.bf16.msra.mxu0 %v2077_v40  ;;  %v2117_v40 = vpack.c.bf16 %v1116_v37, %v1114_v36  ;;  %v1243_v36 = vld [vmem:[#allocation5 + $0xc10] sm:$0xff]  ;;  %v1246_v37 = vld [vmem:[#allocation5 + $0xc28] sm:$0xff] }
 0x339   : > { %v730_v11 = vpop.f32.mrb[4].mxu0 }
 0x33a   : > { %v731_v12 = vadd.f32 %v730_v11, %v657_v9  ;;  %v732_v13 = vpop.f32.mrb[5].mxu0  ;;  %v1100_v11 = vld [vmem:[#allocation5 + $0xab0] sm:$0xff] }
 0x33b   : > { %v733_v14 = vadd.f32 %v732_v13, %v661_v10  ;;  %v1105_v13 = vld [vmem:[#allocation5 + $0xad8] sm:$0xff] }
 0x33c   : > { %v741_v15 = vmul.f32 0.01, %v731_v12 }
 0x33d   : > { %v742_v16 = vmul.f32 0.01, %v733_v14  ;;  %v736_v17 = vpop.f32.mrb[6].mxu0 }
 0x33e   : > { %v737_v18 = vadd.f32 %v736_v17, %v657_v9  ;;  %v738_v19 = vpop.f32.mrb[7].mxu0  ;;  %v745_v22 = vmax.f32 %v731_v12, %v741_v15  ;;  %v2099_v9 = vpack.c.bf16 %v1101_v7, %v1099_v6  ;;  %v1103_v12 = vld [vmem:[#allocation5 + $0xac8] sm:$0xff]  ;;  %v1104_v17 = vld [vmem:[#allocation5 + $0xad0] sm:$0xff] }
 0x33f   : > { %v746_v20 = vmax.f32 %v733_v14, %v742_v16  ;;  %v739_v21 = vadd.f32 %v738_v19, %v661_v10  ;;  %v1098_v10 = vld [vmem:[#allocation5 + $0xaa0] sm:$0xff]  ;;  %v2103_v15 = vpack.c.bf16 %v1105_v13, %v1103_v12  ;;  %v1109_v19 = vld [vmem:[#allocation5 + $0xaf8] sm:$0xff] }
 0x340   : > { %v743_v23 = vmul.f32 0.01, %v737_v18  ;;  %v2101_v14 = vpack.c.bf16 %v1100_v11, %v1098_v10  ;;  %v1102_v16 = vld [vmem:[#allocation5 + $0xac0] sm:$0xff] }
 0x341   : > { %v744_v24 = vmul.f32 0.01, %v739_v21  ;;  %891 = vmatprep.mubr.f32.mxu1 %v746_v20  ;;  %v2105_v20 = vpack.c.bf16 %v1104_v17, %v1102_v16 }
 0x342   : > { %892 = vmatmul.mubr.f32.vlgmr.msra.gmra.mrb[4].mxu1 %v745_v22  ;;  %v747_v27 = vmax.f32 %v737_v18, %v743_v23  ;;  %v1107_v18 = vld [vmem:[#allocation5 + $0xae8] sm:$0xff]  ;;  %v1106_v22 = vld [vmem:[#allocation5 + $0xae0] sm:$0xff]  ;;  %v1108_v23 = vld [vmem:[#allocation5 + $0xaf0] sm:$0xff] }
 0x343   : > { %v748_v25 = vmax.f32 %v739_v21, %v744_v24  ;;  %2082 = vmatpush1.bf16.msra.mxu1 %v2081_v48  ;;  %v2107_v21 = vpack.c.bf16 %v1109_v19, %v1107_v18  ;;  %v1111_v24 = vld [vmem:[#allocation5 + $0xb08] sm:$0xff]  ;;  %v1122_v48 = vld [vmem:[#allocation5 + $0xb60] sm:$0xff]  ;;  %v1137_v19 = vld [vmem:[#allocation5 + $0xbd8] sm:$0xff] }
 0x344   : > { %2084 = vmatprep.subr.bf16.mxu1 %v2083_v49  ;;  %v1124_v49 = vld [vmem:[#allocation5 + $0xb70] sm:$0xff]  ;;  %v1135_v18 = vld [vmem:[#allocation5 + $0xbc8] sm:$0xff] }
 0x345   : > { %897 = vmatprep.mubr.f32.mxu1 %v748_v25  ;;  %v1113_v25 = vld [vmem:[#allocation5 + $0xb18] sm:$0xff]  ;;  %v2125_v52 = vpack.c.bf16 %v1124_v49, %v1122_v48  ;;  %v1251_v48 = vld [vmem:[#allocation5 + $0xc50] sm:$0xff]  ;;  %v1254_v49 = vld [vmem:[#allocation5 + $0xc68] sm:$0xff] }
 0x346   : > { %898 = vmatmul.mubr.f32.gmra.mrb[6].mxu1 %v747_v27  ;;  %v2109_v27 = vpack.c.bf16 %v1108_v23, %v1106_v22  ;;  %v2111_v29 = vpack.c.bf16 %v1113_v25, %v1111_v24  ;;  %v1136_v22 = vld [vmem:[#allocation5 + $0xbd0] sm:$0xff]  ;;  %v1139_v24 = vld [vmem:[#allocation5 + $0xbe8] sm:$0xff]  ;;  %v1141_v25 = vld [vmem:[#allocation5 + $0xbf8] sm:$0xff] }
 0x347   : > { %2086 = vmatpush1.bf16.msra.mxu1 %v2085_v54  ;;  %v1126_v54 = vld [vmem:[#allocation5 + $0xb80] sm:$0xff] }
 0x348   : > { %2088 = vmatprep.subr.bf16.mxu1 %v2087_v55  ;;  %v1128_v55 = vld [vmem:[#allocation5 + $0xb90] sm:$0xff] }
 0x349   : > { %v2129_v58 = vpack.c.bf16 %v1128_v55, %v1126_v54  ;;  %v1255_v54 = vld [vmem:[#allocation5 + $0xc70] sm:$0xff]  ;;  %v1258_v55 = vld [vmem:[#allocation5 + $0xc88] sm:$0xff] }
 0x34b   : > { %2090 = vmatpush1.bf16.msra.mxu1 %v2089_v60  ;;  %v1130_v60 = vld [vmem:[#allocation5 + $0xba0] sm:$0xff] }
 0x34c   : > { %2092 = vmatprep.subr.bf16.mxu1 %v2091_v61  ;;  %v1132_v61 = vld [vmem:[#allocation5 + $0xbb0] sm:$0xff] }
 0x34d   : > { %v2133_v62 = vpack.c.bf16 %v1132_v61, %v1130_v60  ;;  %v1259_v60 = vld [vmem:[#allocation5 + $0xc90] sm:$0xff]  ;;  %v1262_v61 = vld [vmem:[#allocation5 + $0xca8] sm:$0xff] }
 0x34f   : > { %2094 = vmatpush1.bf16.msra.mxu1 %v2093_v2 }
 0x350   : > { %2096 = vmatprep.subr.bf16.mxu1 %v2095_v3 }
 0x353   : > { %2098 = vmatpush1.bf16.msra.mxu1 %v2097_v8 }
 0x354   : > { %2100 = vmatprep.subr.bf16.mxu1 %v2099_v9 }
 0x357   : > { %2102 = vmatpush1.bf16.msra.mxu1 %v2101_v14 }
 0x358   : > { %2104 = vmatprep.subr.bf16.mxu1 %v2103_v15 }
 0x35b   : > { %2106 = vmatpush1.bf16.msra.mxu1 %v2105_v20  ;;  %v2135_v20 = vpack.c.bf16 %v1137_v19, %v1135_v18  ;;  %v1273_v19 = vld [vmem:[#allocation5 + $0xd00] sm:$0xff] }
 0x35c   : > { %2108 = vmatprep.subr.bf16.mxu1 %v2107_v21  ;;  %v1134_v21 = vld [vmem:[#allocation5 + $0xbc0] sm:$0xff] }
 0x35d   : > { %v2137_v23 = vpack.c.bf16 %v1136_v22, %v1134_v21  ;;  %v1278_v21 = vld [vmem:[#allocation5 + $0xd28] sm:$0xff]  ;;  %v1280_v22 = vld [vmem:[#allocation5 + $0xd38] sm:$0xff] }
 0x35f   : > { %2110 = vmatpush1.bf16.msra.mxu1 %v2109_v27  ;;  %v2139_v27 = vpack.c.bf16 %v1141_v25, %v1139_v24  ;;  %v2179_v24 = vpack.c.bf16 %v1280_v22, %v1278_v21  ;;  %v1277_v25 = vld [vmem:[#allocation5 + $0xd20] sm:$0xff]  ;;  %v1405_v21 = vld [vmem:[#allocation5 + $0xe08] sm:$0xff]  ;;  %v1407_v22 = vld [vmem:[#allocation5 + $0xe18] sm:$0xff] }
 0x360   : > { %2112 = vmatprep.subr.bf16.mxu1 %v2111_v29  ;;  %v1138_v29 = vld [vmem:[#allocation5 + $0xbe0] sm:$0xff] }
 0x361   : > { %v2141_v31 = vpack.c.bf16 %v1140_v30, %v1138_v29  ;;  %v1282_v29 = vld [vmem:[#allocation5 + $0xd48] sm:$0xff]  ;;  %v1284_v30 = vld [vmem:[#allocation5 + $0xd58] sm:$0xff] }
 0x363   : > { %2114 = vmatpush1.bf16.msra.mxu1 %v2113_v34  ;;  %v1241_v34 = vld [vmem:[#allocation5 + $0xc00] sm:$0xff] }
 0x364   : > { %2116 = vmatprep.subr.bf16.mxu1 %v2115_v35  ;;  %v2143_v35 = vpack.c.bf16 %v1244_v33, %v1242_v32  ;;  %v2145_v39 = vpack.c.bf16 %v1243_v36, %v1241_v34  ;;  %v2183_v32 = vpack.c.bf16 %v1284_v30, %v1282_v29  ;;  %v1281_v33 = vld [vmem:[#allocation5 + $0xd40] sm:$0xff]  ;;  %v1283_v34 = vld [vmem:[#allocation5 + $0xd50] sm:$0xff]  ;;  %v1288_v36 = vld [vmem:[#allocation5 + $0xd78] sm:$0xff] }
 0x365   : > { %v1411_v29 = vld [vmem:[#allocation5 + $0xe38] sm:$0xff] }
 0x366   : > { %2144 = vmatprep.subr.bf16.mxu0 %v2143_v35  ;;  %v1286_v35 = vld [vmem:[#allocation5 + $0xd68] sm:$0xff] }
 0x367   : > { %2118 = vmatpush1.bf16.msra.mxu1 %v2117_v40  ;;  %v2147_v40 = vpack.c.bf16 %v1248_v38, %v1246_v37  ;;  %v2185_v37 = vpack.c.bf16 %v1283_v34, %v1281_v33  ;;  %v2187_v38 = vpack.c.bf16 %v1288_v36, %v1286_v35  ;;  %v1410_v33 = vld [vmem:[#allocation5 + $0xe30] sm:$0xff]  ;;  %v1413_v34 = vld [vmem:[#allocation5 + $0xe48] sm:$0xff]  ;;  %v1415_v35 = vld [vmem:[#allocation5 + $0xe58] sm:$0xff] }
 0x368   : > { %2120 = vmatprep.subr.bf16.mxu1 %v2119_v41  ;;  %v1245_v41 = vld [vmem:[#allocation5 + $0xc20] sm:$0xff] }
 0x369   : > { %v2149_v45 = vpack.c.bf16 %v1247_v42, %v1245_v41  ;;  %v1290_v41 = vld [vmem:[#allocation5 + $0xd88] sm:$0xff]  ;;  %v1292_v42 = vld [vmem:[#allocation5 + $0xd98] sm:$0xff] }
 0x36b   : > { %2122 = vmatpush1.bf16.msra.mxu1 %v2121_v46  ;;  %v2151_v46 = vpack.c.bf16 %v1252_v44, %v1250_v43  ;;  %v2191_v44 = vpack.c.bf16 %v1292_v42, %v1290_v41  ;;  %v1419_v41 = vld [vmem:[#allocation5 + $0xe78] sm:$0xff] }
 0x36c   : > { %2124 = vmatprep.subr.bf16.mxu1 %v2123_v47  ;;  %v1249_v47 = vld [vmem:[#allocation5 + $0xc40] sm:$0xff] }
 0x36d   : > { %v2153_v51 = vpack.c.bf16 %v1251_v48, %v1249_v47  ;;  %v1294_v47 = vld [vmem:[#allocation5 + $0xda8] sm:$0xff]  ;;  %v1296_v48 = vld [vmem:[#allocation5 + $0xdb8] sm:$0xff] }
 0x36f   : > { %2126 = vmatpush1.bf16.msra.mxu1 %v2125_v52  ;;  %v2155_v52 = vpack.c.bf16 %v1256_v50, %v1254_v49  ;;  %v2195_v50 = vpack.c.bf16 %v1296_v48, %v1294_v47  ;;  %v1423_v47 = vld [vmem:[#allocation5 + $0xe98] sm:$0xff] }
 0x370   : > { %2128 = vmatprep.subr.bf16.mxu1 %v2127_v53  ;;  %v1253_v53 = vld [vmem:[#allocation5 + $0xc60] sm:$0xff] }
 0x371   : > { %v2157_v57 = vpack.c.bf16 %v1255_v54, %v1253_v53  ;;  %v980_v54 = vld [vmem:[#allocation7 + $0x4] ss:$8 sm:$0x3] }
 0x373   : > { %2130 = vmatpush1.bf16.msra.mxu1 %v2129_v58  ;;  %v2159_v58 = vpack.c.bf16 %v1260_v56, %v1258_v55  ;;  %v985_v55 = vrot.slane %v980_v54, %v2773_v26  ;;  %v989_v56 = vrot.slane %v980_v54, %v2775_v28 }
 0x374   : > { %2132 = vmatprep.subr.bf16.mxu1 %v2131_v59  ;;  %v1257_v59 = vld [vmem:[#allocation5 + $0xc80] sm:$0xff] }
 0x375   : > { %v2161_v63 = vpack.c.bf16 %v1259_v60, %v1257_v59 }
 0x377   : > { %2134 = vmatpush1.bf16.msra.mxu1 %v2133_v62  ;;  %v1264_v62 = vld [vmem:[#allocation5 + $0xcb8] sm:$0xff] }
 0x378   : > { %2136 = vmatprep.subr.bf16.mxu1 %v2135_v20  ;;  %v1275_v20 = vld [vmem:[#allocation5 + $0xd10] sm:$0xff] }
 0x37b   : > { %2138 = vmatpush1.bf16.msra.mxu1 %v2137_v23  ;;  %v2177_v23 = vpack.c.bf16 %v1275_v20, %v1273_v19  ;;  %v1303_v19 = vld [vmem:[#allocation5 + $0xdf0] sm:$0xff] }
 0x37c   : > { %2140 = vmatprep.subr.bf16.mxu1 %v2139_v27  ;;  %v1279_v27 = vld [vmem:[#allocation5 + $0xd30] sm:$0xff] }
 0x37f   : > { %2142 = vmatpush1.bf16.msra.mxu1 %v2141_v31  ;;  %v2181_v31 = vpack.c.bf16 %v1279_v27, %v1277_v25  ;;  %v1406_v25 = vld [vmem:[#allocation5 + $0xe10] sm:$0xff]  ;;  %v1409_v27 = vld [vmem:[#allocation5 + $0xe28] sm:$0xff] }
 0x415   : > { %v893_v2 = vpop.f32.mrb[4].mxu1 }
 0x416   : > { %v894_v3 = vadd.f32 %v893_v2, %v820_v0  ;;  %v895_v4 = vpop.f32.mrb[5].mxu1  ;;  %v1263_v2 = vld [vmem:[#allocation5 + $0xcb0] sm:$0xff] }
 0x417   : > { %v896_v5 = vadd.f32 %v895_v4, %v824_v1  ;;  %v1268_v4 = vld [vmem:[#allocation5 + $0xcd8] sm:$0xff] }
 0x418   : > { %v904_v6 = vmul.f32 0.01, %v894_v3 }
 0x419   : > { %v905_v7 = vmul.f32 0.01, %v896_v5  ;;  %v899_v8 = vpop.f32.mrb[6].mxu1 }
 0x41a   : > { %v908_v9 = vmax.f32 %v894_v3, %v904_v6  ;;  %v900_v10 = vadd.f32 %v899_v8, %v820_v0  ;;  %v901_v11 = vpop.f32.mrb[7].mxu1  ;;  %v2163_v0 = vpack.c.bf16 %v1264_v62, %v1262_v61  ;;  %v1266_v3 = vld [vmem:[#allocation5 + $0xcc8] sm:$0xff]  ;;  %v1267_v8 = vld [vmem:[#allocation5 + $0xcd0] sm:$0xff] }
 0x41b   : > { %v909_v12 = vmax.f32 %v896_v5, %v905_v7  ;;  %v902_v13 = vadd.f32 %v901_v11, %v824_v1  ;;  %v1261_v1 = vld [vmem:[#allocation5 + $0xca0] sm:$0xff]  ;;  %v2167_v6 = vpack.c.bf16 %v1268_v4, %v1266_v3 }
 0x41c   : > { %912 = vst [vmem:[%s2786_s23] sm:$0xff] %v908_v9  ;;  %v906_v14 = vmul.f32 0.01, %v900_v10  ;;  %v2165_v5 = vpack.c.bf16 %v1263_v2, %v1261_v1  ;;  %v1265_v7 = vld [vmem:[#allocation5 + $0xcc0] sm:$0xff] }
 0x41d   : > { %v907_v15 = vmul.f32 0.01, %v902_v13  ;;  %1056 = vmatprep.mubr.f32.mxu0 %v909_v12  ;;  %v2169_v11 = vpack.c.bf16 %v1267_v8, %v1265_v7 }
 0x41e   : > { %v910_v16 = vmax.f32 %v900_v10, %v906_v14  ;;  %1057 = vmatmul.mubr.f32.vlgmr.msra.gmra.mrb[8].mxu0 %v908_v9  ;;  %v1270_v9 = vld [vmem:[#allocation5 + $0xce8] sm:$0xff]  ;;  %v1272_v10 = vld [vmem:[#allocation5 + $0xcf8] sm:$0xff]  ;;  %v1271_v14 = vld [vmem:[#allocation5 + $0xcf0] sm:$0xff] }
 0x41f   : > { %v911_v17 = vmax.f32 %v902_v13, %v907_v15  ;;  %2146 = vmatpush1.bf16.msra.mxu0 %v2145_v39  ;;  %v2171_v12 = vpack.c.bf16 %v1272_v10, %v1270_v9  ;;  %v1269_v13 = vld [vmem:[#allocation5 + $0xce0] sm:$0xff]  ;;  %v1274_v15 = vld [vmem:[#allocation5 + $0xd08] sm:$0xff]  ;;  %v1300_v10 = vld [vmem:[#allocation5 + $0xdd8] sm:$0xff] }
 0x420   : > { %913 = vst [vmem:[%s2786_s23 + $0x8] sm:$0xff] %v910_v16  ;;  %2148 = vmatprep.subr.bf16.mxu0 %v2147_v40  ;;  %v1285_v39 = vld [vmem:[#allocation5 + $0xd60] sm:$0xff]  ;;  %v1287_v40 = vld [vmem:[#allocation5 + $0xd70] sm:$0xff]  ;;  %v1298_v9 = vld [vmem:[#allocation5 + $0xdc8] sm:$0xff] }
 0x421   : > { %1062 = vmatprep.mubr.f32.mxu0 %v911_v17  ;;  %v2173_v17 = vpack.c.bf16 %v1271_v14, %v1269_v13  ;;  %v2189_v43 = vpack.c.bf16 %v1287_v40, %v1285_v39  ;;  %v1299_v13 = vld [vmem:[#allocation5 + $0xdd0] sm:$0xff]  ;;  %v1417_v40 = vld [vmem:[#allocation5 + $0xe68] sm:$0xff] }
 0x422   : > { %1063 = vmatmul.mubr.f32.gmra.mrb[10].mxu0 %v910_v16  ;;  %v1276_v16 = vld [vmem:[#allocation5 + $0xd18] sm:$0xff]  ;;  %v1414_v39 = vld [vmem:[#allocation5 + $0xe50] sm:$0xff] }
 0x423   : > { %2150 = vmatpush1.bf16.msra.mxu0 %v2149_v45  ;;  %v2175_v18 = vpack.c.bf16 %v1276_v16, %v1274_v15  ;;  %v1289_v45 = vld [vmem:[#allocation5 + $0xd80] sm:$0xff]  ;;  %v1302_v15 = vld [vmem:[#allocation5 + $0xde8] sm:$0xff]  ;;  %v1304_v16 = vld [vmem:[#allocation5 + $0xdf8] sm:$0xff] }
 0x424   : > { %2152 = vmatprep.subr.bf16.mxu0 %v2151_v46  ;;  %v1291_v46 = vld [vmem:[#allocation5 + $0xd90] sm:$0xff] }
 0x425   : > { %v2193_v49 = vpack.c.bf16 %v1291_v46, %v1289_v45  ;;  %v1418_v45 = vld [vmem:[#allocation5 + $0xe70] sm:$0xff]  ;;  %v1421_v46 = vld [vmem:[#allocation5 + $0xe88] sm:$0xff] }
 0x427   : > { %2154 = vmatpush1.bf16.msra.mxu0 %v2153_v51  ;;  %v1293_v51 = vld [vmem:[#allocation5 + $0xda0] sm:$0xff] }
 0x428   : > { %2156 = vmatprep.subr.bf16.mxu0 %v2155_v52  ;;  %v1295_v52 = vld [vmem:[#allocation5 + $0xdb0] sm:$0xff] }
 0x429   : > { %v2197_v53 = vpack.c.bf16 %v1295_v52, %v1293_v51  ;;  %v1422_v51 = vld [vmem:[#allocation5 + $0xe90] sm:$0xff]  ;;  %v1425_v52 = vld [vmem:[#allocation5 + $0xea8] sm:$0xff] }
 0x42b   : > { %2158 = vmatpush1.bf16.msra.mxu0 %v2157_v57 }
 0x42c   : > { %2160 = vmatprep.subr.bf16.mxu0 %v2159_v58 }
 0x42f   : > { %2162 = vmatpush1.bf16.msra.mxu0 %v2161_v63 }
 0x430   : > { %2164 = vmatprep.subr.bf16.mxu0 %v2163_v0 }
 0x433   : > { %2166 = vmatpush1.bf16.msra.mxu0 %v2165_v5 }
 0x434   : > { %2168 = vmatprep.subr.bf16.mxu0 %v2167_v6 }
 0x437   : > { %2170 = vmatpush1.bf16.msra.mxu0 %v2169_v11  ;;  %v2199_v11 = vpack.c.bf16 %v1300_v10, %v1298_v9  ;;  %v1436_v10 = vld [vmem:[#allocation5 + $0xf00] sm:$0xff] }
 0x438   : > { %2172 = vmatprep.subr.bf16.mxu0 %v2171_v12  ;;  %v1297_v12 = vld [vmem:[#allocation5 + $0xdc0] sm:$0xff] }
 0x439   : > { %v2201_v14 = vpack.c.bf16 %v1299_v13, %v1297_v12  ;;  %v1441_v12 = vld [vmem:[#allocation5 + $0xf28] sm:$0xff]  ;;  %v1443_v13 = vld [vmem:[#allocation5 + $0xf38] sm:$0xff] }
 0x43b   : > { %2174 = vmatpush1.bf16.msra.mxu0 %v2173_v17  ;;  %v2203_v17 = vpack.c.bf16 %v1304_v16, %v1302_v15  ;;  %v2243_v15 = vpack.c.bf16 %v1443_v13, %v1441_v12  ;;  %v1440_v16 = vld [vmem:[#allocation5 + $0xf20] sm:$0xff] }
 0x43c   : > { %2176 = vmatprep.subr.bf16.mxu0 %v2175_v18  ;;  %v1301_v18 = vld [vmem:[#allocation5 + $0xde0] sm:$0xff] }
 0x43d   : > { %v2205_v20 = vpack.c.bf16 %v1303_v19, %v1301_v18  ;;  %v1445_v18 = vld [vmem:[#allocation5 + $0xf48] sm:$0xff]  ;;  %v1447_v19 = vld [vmem:[#allocation5 + $0xf58] sm:$0xff] }
 0x43e   : > { %v1306_v12 = vld [vmem:[#allocation7 + $0x6] ss:$8 sm:$0x3] }
 0x43f   : > { %2178 = vmatpush1.bf16.msra.mxu0 %v2177_v23  ;;  %v1404_v23 = vld [vmem:[#allocation5 + $0xe00] sm:$0xff]  ;;  %v1311_v13 = vrot.slane %v1306_v12, %v2773_v26 }
 0x440   : > { %2180 = vmatprep.subr.bf16.mxu0 %v2179_v24  ;;  %v2207_v24 = vpack.c.bf16 %v1407_v22, %v1405_v21  ;;  %v2209_v30 = vpack.c.bf16 %v1406_v25, %v1404_v23  ;;  %v2247_v21 = vpack.c.bf16 %v1447_v19, %v1445_v18  ;;  %v1444_v22 = vld [vmem:[#allocation5 + $0xf40] sm:$0xff]  ;;  %v1446_v23 = vld [vmem:[#allocation5 + $0xf50] sm:$0xff]  ;;  %v1451_v25 = vld [vmem:[#allocation5 + $0xf78] sm:$0xff] }
 0x442   : > { %2208 = vmatprep.subr.bf16.mxu1 %v2207_v24  ;;  %v1449_v24 = vld [vmem:[#allocation5 + $0xf68] sm:$0xff] }
 0x443   : > { %2182 = vmatpush1.bf16.msra.mxu0 %v2181_v31  ;;  %v2211_v31 = vpack.c.bf16 %v1411_v29, %v1409_v27  ;;  %v2249_v27 = vpack.c.bf16 %v1446_v23, %v1444_v22  ;;  %v2251_v29 = vpack.c.bf16 %v1451_v25, %v1449_v24 }
 0x444   : > { %2184 = vmatprep.subr.bf16.mxu0 %v2183_v32  ;;  %v1408_v32 = vld [vmem:[#allocation5 + $0xe20] sm:$0xff] }
 0x445   : > { %v2213_v36 = vpack.c.bf16 %v1410_v33, %v1408_v32  ;;  %v1453_v32 = vld [vmem:[#allocation5 + $0xf88] sm:$0xff]  ;;  %v1455_v33 = vld [vmem:[#allocation5 + $0xf98] sm:$0xff] }
 0x447   : > { %2186 = vmatpush1.bf16.msra.mxu0 %v2185_v37  ;;  %v2215_v37 = vpack.c.bf16 %v1415_v35, %v1413_v34  ;;  %v2255_v35 = vpack.c.bf16 %v1455_v33, %v1453_v32 }
 0x448   : > { %2188 = vmatprep.subr.bf16.mxu0 %v2187_v38  ;;  %v1412_v38 = vld [vmem:[#allocation5 + $0xe40] sm:$0xff] }
 0x449   : > { %v2217_v42 = vpack.c.bf16 %v1414_v39, %v1412_v38  ;;  %v1457_v38 = vld [vmem:[#allocation5 + $0xfa8] sm:$0xff]  ;;  %v1459_v39 = vld [vmem:[#allocation5 + $0xfb8] sm:$0xff] }
 0x44b   : > { %2190 = vmatpush1.bf16.msra.mxu0 %v2189_v43  ;;  %v2219_v43 = vpack.c.bf16 %v1419_v41, %v1417_v40  ;;  %v2259_v41 = vpack.c.bf16 %v1459_v39, %v1457_v38 }
 0x44c   : > { %2192 = vmatprep.subr.bf16.mxu0 %v2191_v44  ;;  %v1416_v44 = vld [vmem:[#allocation5 + $0xe60] sm:$0xff] }
 0x44d   : > { %v2221_v48 = vpack.c.bf16 %v1418_v45, %v1416_v44  ;;  %v1143_v45 = vld [vmem:[#allocation7 + $0x5] ss:$8 sm:$0x3] }
 0x44f   : > { %2194 = vmatpush1.bf16.msra.mxu0 %v2193_v49  ;;  %v2223_v49 = vpack.c.bf16 %v1423_v47, %v1421_v46  ;;  %v1148_v46 = vrot.slane %v1143_v45, %v2773_v26  ;;  %v1152_v47 = vrot.slane %v1143_v45, %v2775_v28 }
 0x450   : > { %2196 = vmatprep.subr.bf16.mxu0 %v2195_v50  ;;  %v1420_v50 = vld [vmem:[#allocation5 + $0xe80] sm:$0xff] }
 0x451   : > { %v2225_v54 = vpack.c.bf16 %v1422_v51, %v1420_v50 }
 0x453   : > { %2198 = vmatpush1.bf16.msra.mxu0 %v2197_v53  ;;  %v1427_v53 = vld [vmem:[#allocation5 + $0xeb8] sm:$0xff] }
 0x454   : > { %2200 = vmatprep.subr.bf16.mxu0 %v2199_v11  ;;  %v1438_v11 = vld [vmem:[#allocation5 + $0xf10] sm:$0xff] }
 0x457   : > { %2202 = vmatpush1.bf16.msra.mxu0 %v2201_v14  ;;  %v2241_v14 = vpack.c.bf16 %v1438_v11, %v1436_v10  ;;  %v1466_v10 = vld [vmem:[#allocation5 + $0xff0] sm:$0xff] }
 0x458   : > { %2204 = vmatprep.subr.bf16.mxu0 %v2203_v17  ;;  %v1442_v17 = vld [vmem:[#allocation5 + $0xf30] sm:$0xff] }
 0x45b   : > { %2206 = vmatpush1.bf16.msra.mxu0 %v2205_v20  ;;  %v2245_v20 = vpack.c.bf16 %v1442_v17, %v1440_v16 }
 0x4f1   : > { %v1058_v57 = vpop.f32.mrb[8].mxu0 }
 0x4f2   : > { %v1059_v58 = vadd.f32 %v1058_v57, %v985_v55  ;;  %v1060_v59 = vpop.f32.mrb[9].mxu0  ;;  %v1426_v57 = vld [vmem:[#allocation5 + $0xeb0] sm:$0xff] }
 0x4f3   : > { %v1061_v60 = vadd.f32 %v1060_v59, %v989_v56  ;;  %v1431_v59 = vld [vmem:[#allocation5 + $0xed8] sm:$0xff] }
 0x4f4   : > { %v1069_v61 = vmul.f32 0.01, %v1059_v58 }
 0x4f5   : > { %v1070_v62 = vmul.f32 0.01, %v1061_v60  ;;  %v1064_v63 = vpop.f32.mrb[10].mxu0 }
 0x4f6   : > { %v1065_v0 = vadd.f32 %v1064_v63, %v985_v55  ;;  %v1066_v1 = vpop.f32.mrb[11].mxu0  ;;  %v1073_v4 = vmax.f32 %v1059_v58, %v1069_v61  ;;  %v2227_v55 = vpack.c.bf16 %v1427_v53, %v1425_v52  ;;  %v1429_v58 = vld [vmem:[#allocation5 + $0xec8] sm:$0xff]  ;;  %v1430_v63 = vld [vmem:[#allocation5 + $0xed0] sm:$0xff] }
 0x4f7   : > { %v1074_v2 = vmax.f32 %v1061_v60, %v1070_v62  ;;  %v1067_v3 = vadd.f32 %v1066_v1, %v989_v56  ;;  %v1424_v56 = vld [vmem:[#allocation5 + $0xea0] sm:$0xff]  ;;  %v2231_v61 = vpack.c.bf16 %v1431_v59, %v1429_v58  ;;  %v1435_v1 = vld [vmem:[#allocation5 + $0xef8] sm:$0xff] }
 0x4f8   : > { %v1071_v5 = vmul.f32 0.01, %v1065_v0  ;;  %v2229_v60 = vpack.c.bf16 %v1426_v57, %v1424_v56  ;;  %v1428_v62 = vld [vmem:[#allocation5 + $0xec0] sm:$0xff] }
 0x4f9   : > { %v1072_v6 = vmul.f32 0.01, %v1067_v3  ;;  %1219 = vmatprep.mubr.f32.mxu1 %v1074_v2  ;;  %v2233_v2 = vpack.c.bf16 %v1430_v63, %v1428_v62 }
 0x4fa   : > { %1220 = vmatmul.mubr.f32.vlgmr.msra.gmra.mrb[8].mxu1 %v1073_v4  ;;  %v1075_v8 = vmax.f32 %v1065_v0, %v1071_v5  ;;  %v1433_v0 = vld [vmem:[#allocation5 + $0xee8] sm:$0xff]  ;;  %v1432_v4 = vld [vmem:[#allocation5 + $0xee0] sm:$0xff]  ;;  %v1434_v5 = vld [vmem:[#allocation5 + $0xef0] sm:$0xff] }
 0x4fb   : > { %v1076_v7 = vmax.f32 %v1067_v3, %v1072_v6  ;;  %2210 = vmatpush1.bf16.msra.mxu1 %v2209_v30  ;;  %v2235_v3 = vpack.c.bf16 %v1435_v1, %v1433_v0  ;;  %v1437_v6 = vld [vmem:[#allocation5 + $0xf08] sm:$0xff]  ;;  %v1448_v30 = vld [vmem:[#allocation5 + $0xf60] sm:$0xff]  ;;  %v1463_v1 = vld [vmem:[#allocation5 + $0xfd8] sm:$0xff] }
 0x4fc   : > { %2212 = vmatprep.subr.bf16.mxu1 %v2211_v31  ;;  %v1450_v31 = vld [vmem:[#allocation5 + $0xf70] sm:$0xff]  ;;  %v1461_v0 = vld [vmem:[#allocation5 + $0xfc8] sm:$0xff] }
 0x4fd   : > { %1225 = vmatprep.mubr.f32.mxu1 %v1076_v7  ;;  %v1439_v7 = vld [vmem:[#allocation5 + $0xf18] sm:$0xff]  ;;  %v2253_v34 = vpack.c.bf16 %v1450_v31, %v1448_v30 }
 0x4fe   : > { %1226 = vmatmul.mubr.f32.gmra.mrb[10].mxu1 %v1075_v8  ;;  %v2237_v8 = vpack.c.bf16 %v1434_v5, %v1432_v4  ;;  %v2239_v9 = vpack.c.bf16 %v1439_v7, %v1437_v6  ;;  %v1462_v4 = vld [vmem:[#allocation5 + $0xfd0] sm:$0xff]  ;;  %v1465_v6 = vld [vmem:[#allocation5 + $0xfe8] sm:$0xff]  ;;  %v1467_v7 = vld [vmem:[#allocation5 + $0xff8] sm:$0xff] }
 0x4ff   : > { %2214 = vmatpush1.bf16.msra.mxu1 %v2213_v36  ;;  %v1452_v36 = vld [vmem:[#allocation5 + $0xf80] sm:$0xff] }
 0x500   : > { %2216 = vmatprep.subr.bf16.mxu1 %v2215_v37  ;;  %v1454_v37 = vld [vmem:[#allocation5 + $0xf90] sm:$0xff] }
 0x501   : > { %v2257_v40 = vpack.c.bf16 %v1454_v37, %v1452_v36 }
 0x503   : > { %2218 = vmatpush1.bf16.msra.mxu1 %v2217_v42  ;;  %v1456_v42 = vld [vmem:[#allocation5 + $0xfa0] sm:$0xff] }
 0x504   : > { %2220 = vmatprep.subr.bf16.mxu1 %v2219_v43  ;;  %v1458_v43 = vld [vmem:[#allocation5 + $0xfb0] sm:$0xff] }
 0x505   : > { %v2261_v44 = vpack.c.bf16 %v1458_v43, %v1456_v42 }
 0x507   : > { %2222 = vmatpush1.bf16.msra.mxu1 %v2221_v48 }
 0x508   : > { %2224 = vmatprep.subr.bf16.mxu1 %v2223_v49 }
 0x50b   : > { %2226 = vmatpush1.bf16.msra.mxu1 %v2225_v54 }
 0x50c   : > { %2228 = vmatprep.subr.bf16.mxu1 %v2227_v55 }
 0x50f   : > { %2230 = vmatpush1.bf16.msra.mxu1 %v2229_v60 }
 0x510   : > { %2232 = vmatprep.subr.bf16.mxu1 %v2231_v61 }
 0x513   : > { %2234 = vmatpush1.bf16.msra.mxu1 %v2233_v2  ;;  %v2263_v2 = vpack.c.bf16 %v1463_v1, %v1461_v0 }
 0x514   : > { %2236 = vmatprep.subr.bf16.mxu1 %v2235_v3  ;;  %v1460_v3 = vld [vmem:[#allocation5 + $0xfc0] sm:$0xff] }
 0x515   : > { %v2265_v5 = vpack.c.bf16 %v1462_v4, %v1460_v3 }
 0x517   : > { %2238 = vmatpush1.bf16.msra.mxu1 %v2237_v8  ;;  %v2267_v8 = vpack.c.bf16 %v1467_v7, %v1465_v6 }
 0x518   : > { %2240 = vmatprep.subr.bf16.mxu1 %v2239_v9  ;;  %v1464_v9 = vld [vmem:[#allocation5 + $0xfe0] sm:$0xff] }
 0x519   : > { %v2269_v11 = vpack.c.bf16 %v1466_v10, %v1464_v9 }
 0x51b   : > { %2242 = vmatpush1.bf16.msra.mxu1 %v2241_v14  ;;  %v1315_v14 = vrot.slane %v1306_v12, %v2775_v28 }
 0x51c   : > { %2244 = vmatprep.subr.bf16.mxu1 %v2243_v15 }
 0x51f   : > { %2246 = vmatpush1.bf16.msra.mxu1 %v2245_v20 }
 0x520   : > { %2248 = vmatprep.subr.bf16.mxu1 %v2247_v21 }
 0x523   : > { %2250 = vmatpush1.bf16.msra.mxu1 %v2249_v27 }
 0x524   : > { %2252 = vmatprep.subr.bf16.mxu1 %v2251_v29 }
 0x527   : > { %2254 = vmatpush1.bf16.msra.mxu1 %v2253_v34 }
 0x528   : > { %2256 = vmatprep.subr.bf16.mxu1 %v2255_v35 }
 0x52b   : > { %2258 = vmatpush1.bf16.msra.mxu1 %v2257_v40 }
 0x52c   : > { %2260 = vmatprep.subr.bf16.mxu1 %v2259_v41 }
 0x52f   : > { %2262 = vmatpush1.bf16.msra.mxu1 %v2261_v44 }
 0x530   : > { %2264 = vmatprep.subr.bf16.mxu1 %v2263_v2 }
 0x533   : > { %2266 = vmatpush1.bf16.msra.mxu1 %v2265_v5 }
 0x534   : > { %2268 = vmatprep.subr.bf16.mxu1 %v2267_v8 }
 0x537   : > { %2270 = vmatpush1.bf16.msra.mxu1 %v2269_v11 }
 0x5cd   : > { %v1221_v48 = vpop.f32.mrb[8].mxu1 }
 0x5ce   : > { %v1222_v49 = vadd.f32 %v1221_v48, %v1148_v46  ;;  %v1223_v50 = vpop.f32.mrb[9].mxu1 }
 0x5cf   : > { %v1224_v51 = vadd.f32 %v1223_v50, %v1152_v47 }
 0x5d0   : > { %v1232_v52 = vmul.f32 0.01, %v1222_v49 }
 0x5d1   : > { %v1233_v53 = vmul.f32 0.01, %v1224_v51  ;;  %v1227_v54 = vpop.f32.mrb[10].mxu1 }
 0x5d2   : > { %v1228_v55 = vadd.f32 %v1227_v54, %v1148_v46  ;;  %v1229_v56 = vpop.f32.mrb[11].mxu1  ;;  %v1236_v59 = vmax.f32 %v1222_v49, %v1232_v52 }
 0x5d3   : > { %v1237_v57 = vmax.f32 %v1224_v51, %v1233_v53  ;;  %v1230_v58 = vadd.f32 %v1229_v56, %v1152_v47 }
 0x5d4   : > { %v1234_v60 = vmul.f32 0.01, %v1228_v55 }
 0x5d5   : > { %v1235_v61 = vmul.f32 0.01, %v1230_v58  ;;  %1382 = vmatprep.mubr.f32.mxu0 %v1237_v57 }
 0x5d6   : > { %1383 = vmatmul.mubr.f32.vlgmr.msra.gmra.mrb[12].mxu0 %v1236_v59  ;;  %v1238_v63 = vmax.f32 %v1228_v55, %v1234_v60 }
 0x5d7   : > { %v1239_v62 = vmax.f32 %v1230_v58, %v1235_v61 }
 0x5d9   : > { %1388 = vmatprep.mubr.f32.mxu0 %v1239_v62 }
 0x5da   : > { %1389 = vmatmul.mubr.f32.gmra.mrb[14].mxu0 %v1238_v63 }
 0x6a9   : > { %v1384_v15 = vpop.f32.mrb[12].mxu0 }
 0x6aa   : > { %v1385_v16 = vadd.f32 %v1384_v15, %v1311_v13  ;;  %v1386_v17 = vpop.f32.mrb[13].mxu0 }
 0x6ab   : > { %v1387_v18 = vadd.f32 %v1386_v17, %v1315_v14 }
 0x6ac   : > { %v1395_v19 = vmul.f32 0.01, %v1385_v16 }
 0x6ad   : > { %v1396_v20 = vmul.f32 0.01, %v1387_v18  ;;  %v1390_v21 = vpop.f32.mrb[14].mxu0 }
 0x6ae   : > { %v1391_v22 = vadd.f32 %v1390_v21, %v1311_v13  ;;  %v1392_v23 = vpop.f32.mrb[15].mxu0  ;;  %v1399_v27 = vmax.f32 %v1385_v16, %v1395_v19 }
 0x6af   : > { %v1400_v24 = vmax.f32 %v1387_v18, %v1396_v20  ;;  %v1393_v25 = vadd.f32 %v1392_v23, %v1315_v14 }
 0x6b0   : > { %v1397_v29 = vmul.f32 0.01, %v1391_v22 }
 0x6b1   : > { %v1398_v30 = vmul.f32 0.01, %v1393_v25  ;;  %1545 = vmatprep.mubr.f32.mxu1 %v1400_v24 }
 0x6b2   : > { %1546 = vmatmul.mubr.f32.vlgmr.msra.gmra.mrb[12].mxu1 %v1399_v27  ;;  %v1401_v32 = vmax.f32 %v1391_v22, %v1397_v29 }
 0x6b3   : > { %v1402_v31 = vmax.f32 %v1393_v25, %v1398_v30 }
 0x6b5   : > { %1551 = vmatprep.mubr.f32.mxu1 %v1402_v31 }
 0x6b6   : > { %1552 = vmatmul.mubr.f32.gmra.mrb[14].mxu1 %v1401_v32 }
 0x6b7   : > { %2448 = shalt.err (!%p2445_p1)
}
 0x6b8   : > { %s2449_s26 = scalar_lea.hbm %s2803_s7, 256  ;;  %s2453_s21 = scalar_lea.hbm %s2887_s4, 512 }
 0x6b9   : > { %p2450_p13 = scmp.ne.s32.totalorder %s2803_s7, %s2449_s26  ;;  %p2454_p4 = scmp.lt.u32.totalorder %s2803_s7, %s2887_s4 }
 0x6ba   : > { %p2455_p5 = scmp.lt.u32.totalorder %s2453_s21, %s2449_s26  ;;  %p2457_p11 = scmp.lt.u32.totalorder %s2449_s26, %s2803_s7 }
 0x6bb   : > { %p2451_p6 = pnand %p2450_p13, %p2901_p0 }
 0x6bc   : > { %p2456_p8 = por %p2455_p5, %p2454_p4 }
 0x6bd   : > { %p2452_p10 = pneg %p2451_p6 }
 0x6be   : > { %p2458_p2 = por %p2457_p11, %p2456_p8 }
 0x6c0   : > { %p2459_p3 = pnand %p2458_p2, %p2452_p10 }
 0x6c2   : > { %2462 = shalt.err (!%p2459_p3)
}
 0x6c3   : > { %s2545_s30 = smov 128   ;;  %s2546_s6 = smov 8   ;;  %v1469_v33 = vld [vmem:[#allocation7 + $0x7] ss:$8 sm:$0x3] }
 0x6c4   : > { %2282 = dma.vmem_to_hbm [thread:$0]  (%p2901_p0), %s2798_s11, 256, %s2803_s7, %s1576_s28, %s2545_s30, %s2545_s30, %s2546_s6   ;;  %v1474_v34 = vrot.slane %v1469_v33, %v2773_v26  ;;  %v1478_v35 = vrot.slane %v1469_v33, %v2775_v28 }
 0x6c5   : > { %s247_s27 = scalar_lea.vmem [#allocation8], %s1740_s10  ;;  %s1757_s11 = sshll.u32 %s2596_s19, 9 }
 0x6c6   : > { %s1590_s20 = sshll.u32 %s247_s27, 4  ;;  %s2839_s28 = scalar_lea.hbm %s2886_s3, %s1757_s11  ;;  %s2834_s20 = int_to_ptr.vmem [resolvable:$true] %s1590_s20 }
 0x6c7   : > { %s1571_s29 = scalar_lea.sflag [#allocation4], %s2753_s8  ;;  %s2463_s19 = scalar_lea.vmem %s2834_s20, 512 }
 0x6c8   : > { %p2464_p7 = scmp.ne.s32.totalorder %s2834_s20, %s2463_s19  ;;  %s2547_s5 = smov [#allocation8]  }
 0x6c9   : > { %s2467_s26 = sshll.u32 %s2547_s5, 4  ;;  %s2468_s26 = int_to_ptr.vmem [resolvable:$false] %s2467_s26 }
 0x6ca   : > { %p2465_p9 = pnand %p2464_p7, %p2901_p0  ;;  %s2469_s24 = scalar_lea.vmem %s2468_s26, 1024 }
 0x6cb   : > { %p2470_p1 = scmp.lt.s32.totalorder %s2834_s20, %s2468_s26  ;;  %p2471_p13 = scmp.lt.s32.totalorder %s2469_s24, %s2463_s19 }
 0x6cc   : > { %p2466_p12 = pneg %p2465_p9 }
 0x6cd   : > { %p2472_p6 = por %p2471_p13, %p2470_p1 }
 0x6cf   : > { %p2473_p10 = pnand %p2472_p6, %p2466_p12 }
 0x785   : > { %v1547_v36 = vpop.f32.mrb[12].mxu1 }
 0x786   : > { %v1548_v37 = vadd.f32 %v1547_v36, %v1474_v34  ;;  %v1549_v38 = vpop.f32.mrb[13].mxu1 }
 0x787   : > { %v1550_v39 = vadd.f32 %v1549_v38, %v1478_v35 }
 0x788   : > { %v1558_v40 = vmul.f32 0.01, %v1548_v37 }
 0x789   : > { %v1559_v41 = vmul.f32 0.01, %v1550_v39  ;;  %v1553_v42 = vpop.f32.mrb[14].mxu1 }
 0x78a   : > { %v1562_v43 = vmax.f32 %v1548_v37, %v1558_v40  ;;  %v1554_v44 = vadd.f32 %v1553_v42, %v1474_v34  ;;  %v1555_v45 = vpop.f32.mrb[15].mxu1 }
 0x78b   : > { %v1563_v46 = vmax.f32 %v1550_v39, %v1559_v41  ;;  %v1556_v26 = vadd.f32 %v1555_v45, %v1478_v35 }
 0x78c   : > { %1566 = vst [vmem:[%s247_s27] sm:$0xff] %v1562_v43  ;;  %v1560_v28 = vmul.f32 0.01, %v1554_v44 }
 0x78d   : > { %1567 = vst [vmem:[%s247_s27 + $0x8] sm:$0xff] %v1563_v46  ;;  %v1561_v47 = vmul.f32 0.01, %v1556_v26 }
 0x78e   : > { %v1564_v48 = vmax.f32 %v1554_v44, %v1560_v28 }
 0x78f   : > { %v1565_v49 = vmax.f32 %v1556_v26, %v1561_v47 }
 0x790   : > { %1568 = vst [vmem:[%s247_s27 + $0x10] sm:$0xff] %v1564_v48 }
 0x791   : > { %1569 = vst [vmem:[%s247_s27 + $0x18] sm:$0xff] %v1565_v49 }
 0x792   : > { %2476 = shalt.err (!%p2473_p10)
}
 0x793   : > { %s2477_s25 = scalar_lea.hbm %s2839_s28, 512  ;;  %s2481_s12 = scalar_lea.hbm %s2886_s3, 1024 }
 0x794   : > { %p2478_p4 = scmp.ne.s32.totalorder %s2839_s28, %s2477_s25  ;;  %p2482_p11 = scmp.lt.u32.totalorder %s2839_s28, %s2886_s3 }
 0x795   : > { %p2483_p2 = scmp.lt.u32.totalorder %s2481_s12, %s2477_s25  ;;  %p2485_p7 = scmp.lt.u32.totalorder %s2477_s25, %s2839_s28 }
 0x796   : > { %p2479_p5 = pnand %p2478_p4, %p2901_p0 }
 0x797   : > { %p2484_p3 = por %p2483_p2, %p2482_p11 }
 0x798   : > { %p2480_p8 = pneg %p2479_p5 }
 0x799   : > { %p2486_p9 = por %p2485_p7, %p2484_p3 }
 0x79b   : > { %p2487_p12 = pnand %p2486_p9, %p2480_p8 }
 0x79d   : > { %2490 = shalt.err (!%p2487_p12)
}
 0x79e   : > { %s2548_s27 = smov 256   ;;  %s2549_s11 = smov 16  }
 0x79f   : > { %2281 = dma.vmem_to_hbm [thread:$0]  (%p2901_p0), %s2834_s20, 512, %s2839_s28, %s1571_s29, %s2548_s27, %s2548_s27, %s2549_s11  }
 0x7a0 PF: > { %s1621_s7 = sand.u32 1, %s2525_s15   ;;  %p2902_p1 = scmp.ne.s32.totalorder %s2892_s22, 0 }
 0x7a1   : > { %p2903_p13 = scmp.ge.s32.totalorder %s2537_s18, 2  ;;  %s1622_s10 = scalar_lea.sflag [#allocation4], %s1621_s7 }
 0x7a3   : > { %p2297_p6 = pnand %p2903_p13, %p2902_p1 }
 0x7a5   : > { %2516 = dma.done.wait (!%p2297_p6), %s1622_s10, 512  }
 0x7a6   : > { %2518 = vsyncadd (!%p2297_p6), %s1622_s10, 4294966784  ;;  %s1631_s19 = scalar_lea.sflag [#allocation10], %s1621_s7 }
 0x7a7   : > { %2520 = dma.done.wait (!%p2297_p6), %s1631_s19, 256  }
 0x7a8   : > { %2522 = vsyncadd (!%p2297_p6), %s1631_s19, 4294967040  ;;  %p22_p0 = scmp.ge.s32.totalorder %s2688_s9, 4   ;;  %s2904_s15 = smov %s2529_s16 }
 0x7a9   : > { %s2905_s16 = smov %s2533_s17  ;;  %s2906_s17 = smov %s2704_s14 }
 0x7aa   : > { %s2907_s18 = smov %s2688_s9  ;;  %24 = sbr.rel (!%p22_p0) target bundleno = 8 (0x8), region = 116 }
 0x7b1   :  { %1636 = vsyncpa [#allocation3], 1 }
 0x7b2   :  { %1638 = vsyncpa [#allocation3 + $0x1], 1 }
 0x7b3   :  { %1639 = vsyncpa [#allocation6], 1 }
 0x7b4   :  { %1640 = vsyncpa [#allocation4], 1 }
 0x7b5   :  { %1642 = vsyncpa [#allocation4 + $0x1], 1 }
 0x7b6   :  { %1643 = vsyncpa [#allocation10], 1 }
 0x7b7   :  { %1645 = vsyncpa [#allocation10 + $0x1], 1 }

</bundles_post_ra>
